<compile_context>
chip_gen: v6e
topology: v6e:2x2x1
jax: 0.10.0
libtpu: 0.0.40
codegen_flags: <defaults>
</compile_context>

<pallas_src>
import math

import jax
import jax.numpy as jnp
from jax.experimental import pallas as pl
from jax.experimental.pallas import tpu as pltpu  # noqa: F401

# ----------------------------- small Llama config -----------------------------
VOCAB = 64
HIDDEN = 32
N_HEADS = 4
N_KV_HEADS = 2                      # GQA like Llama3
HEAD_DIM = HIDDEN // N_HEADS        # 8
KV_REP = N_HEADS // N_KV_HEADS      # 2
INTERMEDIATE = 64
N_LAYERS = 2
RMS_EPS = 1e-5                      # Python float -> literal inside kernel
ROPE_THETA = 10000.0
NEG_INF = -1e30                     # Python float (NOT a jax array)

NHD = N_HEADS * HEAD_DIM            # 32 (= HIDDEN)


# ------------------------------ Pallas kernel ---------------------------------
def _stage1_kernel(hs_ref, pad_ref, ln_ref, wqkv_ref, wgu_ref, wod_ref,
                   rope_ref, out_ref):
    """All decoder layers for the whole (small) batch in one invocation.

    hs_ref   : (B*L, H)        f32 hidden states (batch-major rows)
    pad_ref  : (B, 1, L)       f32 keep(1.0) / padded(0.0) key positions
    ln_ref   : (NL, 2, H)      f32 [input RMSNorm ; post-attn RMSNorm] weights
    wqkv_ref : (NL, H, 5*NHD)  bf16 [wq*s | wq*s@R | wk_exp | wk_exp@R | wv_exp]
    wgu_ref  : (NL, H, 2*I)    bf16 [wg | wu]
    wod_ref  : (NL, H+I, H)    bf16 [wo ; wd]
    rope_ref : (2, B*L, NHD)   f32 [cos ; sin], head-tiled and batch-tiled
    out_ref  : (B*L, H)        f32
    """
    H = hs_ref.shape[-1]
    B = pad_ref.shape[0]
    L = pad_ref.shape[-1]
    n_layers = wqkv_ref.shape[0]
    I = INTERMEDIATE

    x = hs_ref[...]                                        # (B*L, H) f32

    # ---- layer-invariant values, hoisted out of the layer loop ----
    row = jax.lax.broadcasted_iota(jnp.int32, (L, L), 0)
    col = jax.lax.broadcasted_iota(jnp.int32, (L, L), 1)
    keep = (row >= col)[None, :, :] & (pad_ref[...] > 0.5)  # (B, L, L)
    bias = jnp.where(keep, 0.0, NEG_INF)                    # additive attn bias

    cos = rope_ref[0]                                       # (B*L, NHD)
    sin = rope_ref[1]

    def rms(t, w):
        return t * jax.lax.rsqrt(jnp.mean(t * t, axis=-1, keepdims=True) + RMS_EPS) * w

    for layer in range(n_layers):                           # unrolled (N_LAYERS=2)
        ln = ln_ref[layer]                                  # (2, H)
        wqkv = wqkv_ref[layer]                              # (H, 5*NHD) bf16
        wgu = wgu_ref[layer]                                # (H, 2*I)   bf16
        wod = wod_ref[layer]                                # (H+I, H)   bf16
        wo = wod[0:H]
        wd = wod[H:H + I]

        # ---- input RMSNorm + ONE fused QKV(+pre-rotated) projection ----
        xn = rms(x, ln[0:1])
        qkv = jnp.dot(xn.astype(jnp.bfloat16), wqkv,
                      preferred_element_type=jnp.float32)   # (B*L, 5*NHD)
        q_lin = qkv[:, 0 * NHD:1 * NHD]
        q_rot = qkv[:, 1 * NHD:2 * NHD]
        k_lin = qkv[:, 2 * NHD:3 * NHD]
        k_rot = qkv[:, 3 * NHD:4 * NHD]
        v     = qkv[:, 4 * NHD:5 * NHD]

        # ---- RoPE on the VPU (rotate_half + 1/sqrt(hd) folded into weights) ----
        q = q_lin * cos + q_rot * sin                       # (B*L, NHD)
        k = k_lin * cos + k_rot * sin                       # (B*L, NHD) kv-expanded

        # ---- attention: per-batch, head-batched einsums (no in-kernel repeat) ----
        ctx_rows = []
        for b in range(B):                                  # unrolled (B=2)
            qb = q[b * L:(b + 1) * L].reshape(L, N_HEADS, HEAD_DIM)
            kb = k[b * L:(b + 1) * L].reshape(L, N_HEADS, HEAD_DIM)
            vb = v[b * L:(b + 1) * L].reshape(L, N_HEADS, HEAD_DIM)
            s = jnp.einsum("lhd,mhd->hlm", qb, kb,
                           preferred_element_type=jnp.float32)   # (NH, L, L)
            s = s + bias[b][None, :, :]
            s = s - jnp.max(s, axis=-1, keepdims=True)
            p = jnp.exp(s)
            p = p * pl.reciprocal(jnp.sum(p, axis=-1, keepdims=True), approx=True)
            cb = jnp.einsum("hlm,mhd->lhd", p, vb,
                            preferred_element_type=jnp.float32)  # (L, NH, HD)
            ctx_rows.append(cb.reshape(L, H))
        ctx = jnp.concatenate(ctx_rows, axis=0)             # (B*L, H)

        h1 = x + jnp.dot(ctx.astype(jnp.bfloat16), wo,
                         preferred_element_type=jnp.float32)

        # ---- post-attention RMSNorm + SwiGLU MLP (fused gate|up matmul) ----
        hn = rms(h1, ln[1:2])
        gu = jnp.dot(hn.astype(jnp.bfloat16), wgu,
                     preferred_element_type=jnp.float32)    # (B*L, 2*I) = 128 lanes
        g = gu[:, :I]
        u = gu[:, I:]
        act = g * jax.nn.sigmoid(g) * u                     # SiLU(gate) * up
        x = h1 + jnp.dot(act.astype(jnp.bfloat16), wd,
                         preferred_element_type=jnp.float32)

    out_ref[...] = x.astype(out_ref.dtype)


# ----------------------------- glue / parameters ------------------------------
def rope_tables(L, dim, theta=ROPE_THETA):
    inv_freq = 1.0 / (theta ** (jnp.arange(0, dim, 2, dtype=jnp.float32) / dim))
    t = jnp.arange(L, dtype=jnp.float32)
    freqs = jnp.outer(t, inv_freq)                      # (L, dim/2)
    emb = jnp.concatenate([freqs, freqs], axis=-1)      # (L, dim)
    return jnp.cos(emb), jnp.sin(emb)


def _rotate_half_matrix(dim):
    """R s.t. x @ R == rotate_half(x) for the last dim of size `dim`."""
    half = dim // 2
    eye = jnp.eye(half, dtype=jnp.float32)
    zero = jnp.zeros((half, half), jnp.float32)
    top = jnp.concatenate([zero, eye], axis=1)          # R[i, i+half] = 1
    bot = jnp.concatenate([-eye, zero], axis=1)         # R[i+half, i] = -1
    return jnp.concatenate([top, bot], axis=0)


def _expand_kv(w):
    """(H, NKV*HD) -> (H, NH*HD): duplicate each kv head KV_REP times (GQA)."""
    Hdim = w.shape[0]
    return jnp.repeat(w.reshape(Hdim, N_KV_HEADS, HEAD_DIM),
                      KV_REP, axis=1).reshape(Hdim, NHD)


def init_params(key):
    keys = jax.random.split(key, 1 + N_LAYERS)
    embed = jax.random.normal(keys[0], (VOCAB, HIDDEN), jnp.float32) * 0.02
    layers = []
    for i in range(N_LAYERS):
        ks = jax.random.split(keys[1 + i], 7)
        ln1 = jnp.ones((1, HIDDEN), jnp.float32)
        wq = jax.random.normal(ks[0], (HIDDEN, N_HEADS * HEAD_DIM), jnp.float32) * 0.02
        wk = jax.random.normal(ks[1], (HIDDEN, N_KV_HEADS * HEAD_DIM), jnp.float32) * 0.02
        wv = jax.random.normal(ks[2], (HIDDEN, N_KV_HEADS * HEAD_DIM), jnp.float32) * 0.02
        wo = jax.random.normal(ks[3], (N_HEADS * HEAD_DIM, HIDDEN), jnp.float32) * 0.02
        ln2 = jnp.ones((1, HIDDEN), jnp.float32)
        wg = jax.random.normal(ks[4], (HIDDEN, INTERMEDIATE), jnp.float32) * 0.02
        wu = jax.random.normal(ks[5], (HIDDEN, INTERMEDIATE), jnp.float32) * 0.02
        wd = jax.random.normal(ks[6], (INTERMEDIATE, HIDDEN), jnp.float32) * 0.02
        layers.append((ln1, wq, wk, wv, wo, ln2, wg, wu, wd))
    return {"embed": embed, "layers": layers}


def llama_stage1_forward(params, input_ids, attention_mask):
    """Mirror LlamaStage1.forward (use_cache=False, output_attentions=False,
    return_dict=False): returns (last_hidden_state, next_cache,
    all_hidden_states, causal_mask, seq_len)."""
    B, L = input_ids.shape

    # embedding lookup (glue gather; hot path is the fused decoder kernel)
    hidden = jnp.take(params["embed"], input_ids, axis=0)          # (B, L, H)

    # causal & padding mask, exactly as the PyTorch module builds & returns it
    tril = jnp.tril(jnp.ones((L, L), dtype=bool))
    causal_mask = (jnp.broadcast_to(tril[None, None], (B, 1, L, L))
                   & attention_mask.astype(bool).reshape(B, 1, 1, L))

    # ---- kernel-side parameter packing (tiny, done once per call) ----
    layers = params["layers"]
    scale = 1.0 / math.sqrt(HEAD_DIM)
    r_full = jnp.kron(jnp.eye(N_HEADS, dtype=jnp.float32),
                      _rotate_half_matrix(HEAD_DIM))               # (NHD, NHD)

    ln_l, wqkv_l, wgu_l, wod_l = [], [], [], []
    for (ln1, wq, wk, wv, wo, ln2, wg, wu, wd) in layers:
        wqs = wq * scale                                           # fold 1/sqrt(hd)
        wk_e = _expand_kv(wk)                                      # fold GQA repeat
        wv_e = _expand_kv(wv)
        wqkv_l.append(jnp.concatenate(
            [wqs, wqs @ r_full, wk_e, wk_e @ r_full, wv_e], axis=1))  # (H, 5*NHD)
        wgu_l.append(jnp.concatenate([wg, wu], axis=1))            # (H, 2*I)
        wod_l.append(jnp.concatenate([wo, wd], axis=0))            # (H+I, H)
        ln_l.append(jnp.concatenate([ln1, ln2], axis=0))           # (2, H)
    ln_s = jnp.stack(ln_l)                                         # (NL, 2, H)   f32
    wqkv_s = jnp.stack(wqkv_l).astype(jnp.bfloat16)                # (NL, H, 160) bf16
    wgu_s = jnp.stack(wgu_l).astype(jnp.bfloat16)                  # (NL, H, 128) bf16
    wod_s = jnp.stack(wod_l).astype(jnp.bfloat16)                  # (NL, 96, H)  bf16

    cos, sin = rope_tables(L, HEAD_DIM)
    cos_bl = jnp.tile(jnp.tile(cos, (1, N_HEADS)), (B, 1))         # (B*L, NHD)
    sin_bl = jnp.tile(jnp.tile(sin, (1, N_HEADS)), (B, 1))
    rope_packed = jnp.stack([cos_bl, sin_bl])                      # (2, B*L, NHD)

    hs_flat = hidden.reshape(B * L, HIDDEN)                        # (B*L, H)
    pad_f = attention_mask.astype(jnp.float32).reshape(B, 1, L)

    # Single gridless invocation: everything (a few tens of KB) lives in VMEM.
    out_flat = pl.pallas_call(
        _stage1_kernel,
        out_shape=jax.ShapeDtypeStruct((B * L, HIDDEN), jnp.float32),
    )(hs_flat, pad_f, ln_s, wqkv_s, wgu_s, wod_s, rope_packed)

    hidden_out = out_flat.reshape(B, L, HIDDEN)

    next_cache = None
    all_hidden_states = None
    return hidden_out, next_cache, all_hidden_states, causal_mask, L


# ------------------------- pure-JAX reference (check) --------------------------
def _ref_layer(x, mask_f, lp, cos, sin):
    ln1, wq, wk, wv, wo, ln2, wg, wu, wd = lp
    B, L, H = x.shape

    def rms(t, w):
        return t * jax.lax.rsqrt(jnp.mean(t * t, axis=-1, keepdims=True) + RMS_EPS) * w[0]

    xn = rms(x, ln1)
    q = (xn @ wq).reshape(B, L, N_HEADS, HEAD_DIM)
    k = (xn @ wk).reshape(B, L, N_KV_HEADS, HEAD_DIM)
    v = (xn @ wv).reshape(B, L, N_KV_HEADS, HEAD_DIM)

    def rope(t):
        half = HEAD_DIM // 2
        rot = jnp.concatenate([-t[..., half:], t[..., :half]], axis=-1)
        return t * cos[None, :, None, :] + rot * sin[None, :, None, :]

    q, k = rope(q), rope(k)
    k = jnp.repeat(k, KV_REP, axis=2)
    v = jnp.repeat(v, KV_REP, axis=2)

    s = jnp.einsum("blhd,bmhd->bhlm", q, k) / math.sqrt(HEAD_DIM)
    s = jnp.where(mask_f[:, None] > 0.5, s, NEG_INF)
    p = jax.nn.softmax(s, axis=-1)
    ctx = jnp.einsum("bhlm,bmhd->blhd", p, v).reshape(B, L, H)
    h1 = x + ctx @ wo

    hn = rms(h1, ln2)
    return h1 + (jax.nn.silu(hn @ wg) * (hn @ wu)) @ wd


def reference_forward(params, input_ids, attention_mask):
    B, L = input_ids.shape
    hidden = jnp.take(params["embed"], input_ids, axis=0)
    tril = jnp.tril(jnp.ones((L, L), dtype=bool))
    mask_f = (jnp.broadcast_to(tril[None], (B, L, L))
              & attention_mask.astype(bool)[:, None, :]).astype(jnp.float32)
    cos, sin = rope_tables(L, HEAD_DIM)
    for lp in params["layers"]:
        hidden = _ref_layer(hidden, mask_f, lp, cos, sin)
    return hidden


# ------------------------------------ main -------------------------------------
if __name__ == "__main__":
    key = jax.random.PRNGKey(0)
    pkey, ikey = jax.random.split(key)
    params = init_params(pkey)

    B, L = 2, 8
    input_ids = jax.random.randint(ikey, (B, L), 0, VOCAB, dtype=jnp.int32)
    attention_mask = jnp.ones((B, L), dtype=jnp.int32)

    last_hidden, next_cache, all_hs, causal_mask, seq_len = llama_stage1_forward(
        params, input_ids, attention_mask)
    jax.block_until_ready(last_hidden)

    ref = reference_forward(params, input_ids, attention_mask)
    assert last_hidden.shape == (B, L, HIDDEN)
    assert causal_mask.shape == (B, 1, L, L) and causal_mask.dtype == jnp.bool_
    assert seq_len == L
    assert next_cache is None and all_hs is None
    assert jnp.allclose(last_hidden, ref, atol=1e-2, rtol=1e-2), "mismatch vs reference"

    print("KERNEL_OK")
</pallas_src>

<mosaic_0001>
module attributes {stable_mosaic.version = 11 : i64} {
  func.func @_stage1_kernel(%arg0: memref<16x32xf32, #tpu.memory_space<vmem>>, %arg1: memref<2x1x8xf32, #tpu.memory_space<vmem>>, %arg2: memref<2x2x32xf32, #tpu.memory_space<vmem>>, %arg3: memref<2x32x160xbf16, #tpu.memory_space<vmem>>, %arg4: memref<2x32x128xbf16, #tpu.memory_space<vmem>>, %arg5: memref<2x96x32xbf16, #tpu.memory_space<vmem>>, %arg6: memref<2x16x32xf32, #tpu.memory_space<vmem>>, %arg7: memref<16x32xf32, #tpu.memory_space<vmem>>) attributes {dimension_semantics = [], scalar_prefetch = 0 : i64, scratch_operands = 0 : i64, tpu.core_type = #tpu.core_type<tc>} {
    %c0 = arith.constant 0 : index
    %c0_0 = arith.constant 0 : index
    %0 = vector.load %arg0[%c0, %c0_0] : memref<16x32xf32, #tpu.memory_space<vmem>>, vector<16x32xf32>
    %1 = tpu.iota {dimensions = array<i32: 0>} : vector<8x8xi32>
    %2 = tpu.iota {dimensions = array<i32: 1>} : vector<8x8xi32>
    %3 = arith.cmpi sge, %1, %2 : vector<8x8xi32>
    %4 = vector.shape_cast %3 : vector<8x8xi1> to vector<1x8x8xi1>
    %c0_1 = arith.constant 0 : index
    %c0_2 = arith.constant 0 : index
    %c0_3 = arith.constant 0 : index
    %5 = vector.load %arg1[%c0_1, %c0_2, %c0_3] : memref<2x1x8xf32, #tpu.memory_space<vmem>>, vector<2x1x8xf32>
    %cst = arith.constant 5.000000e-01 : f32
    %6 = vector.broadcast %cst : f32 to vector<2x1x8xf32>
    %7 = arith.cmpf ogt, %5, %6 : vector<2x1x8xf32>
    %8 = vector.broadcast %4 : vector<1x8x8xi1> to vector<2x8x8xi1>
    %9 = vector.broadcast %7 : vector<2x1x8xi1> to vector<2x8x8xi1>
    %10 = arith.andi %8, %9 : vector<2x8x8xi1>
    %cst_4 = arith.constant 0.000000e+00 : f32
    %cst_5 = arith.constant -1.000000e+30 : f32
    %11 = vector.broadcast %cst_4 : f32 to vector<2x8x8xf32>
    %12 = vector.broadcast %cst_5 : f32 to vector<2x8x8xf32>
    %13 = arith.select %10, %11, %12 : vector<2x8x8xi1>, vector<2x8x8xf32>
    %c0_6 = arith.constant 0 : index
    %c0_7 = arith.constant 0 : index
    %c0_8 = arith.constant 0 : index
    %14 = vector.load %arg6[%c0_6, %c0_7, %c0_8] : memref<2x16x32xf32, #tpu.memory_space<vmem>>, vector<1x16x32xf32>
    %15 = vector.shape_cast %14 : vector<1x16x32xf32> to vector<16x32xf32>
    %c1 = arith.constant 1 : index
    %c0_9 = arith.constant 0 : index
    %c0_10 = arith.constant 0 : index
    %16 = vector.load %arg6[%c1, %c0_9, %c0_10] : memref<2x16x32xf32, #tpu.memory_space<vmem>>, vector<1x16x32xf32>
    %17 = vector.shape_cast %16 : vector<1x16x32xf32> to vector<16x32xf32>
    %c0_11 = arith.constant 0 : index
    %c0_12 = arith.constant 0 : index
    %c0_13 = arith.constant 0 : index
    %18 = vector.load %arg2[%c0_11, %c0_12, %c0_13] : memref<2x2x32xf32, #tpu.memory_space<vmem>>, vector<1x2x32xf32>
    %19 = vector.shape_cast %18 : vector<1x2x32xf32> to vector<2x32xf32>
    %c0_14 = arith.constant 0 : index
    %c0_15 = arith.constant 0 : index
    %c0_16 = arith.constant 0 : index
    %20 = vector.load %arg3[%c0_14, %c0_15, %c0_16] : memref<2x32x160xbf16, #tpu.memory_space<vmem>>, vector<1x32x160xbf16>
    %21 = vector.shape_cast %20 : vector<1x32x160xbf16> to vector<32x160xbf16>
    %c0_17 = arith.constant 0 : index
    %c0_18 = arith.constant 0 : index
    %c0_19 = arith.constant 0 : index
    %22 = vector.load %arg4[%c0_17, %c0_18, %c0_19] : memref<2x32x128xbf16, #tpu.memory_space<vmem>>, vector<1x32x128xbf16>
    %23 = vector.shape_cast %22 : vector<1x32x128xbf16> to vector<32x128xbf16>
    %c0_20 = arith.constant 0 : index
    %c0_21 = arith.constant 0 : index
    %c0_22 = arith.constant 0 : index
    %24 = vector.load %arg5[%c0_20, %c0_21, %c0_22] : memref<2x96x32xbf16, #tpu.memory_space<vmem>>, vector<1x96x32xbf16>
    %25 = vector.shape_cast %24 : vector<1x96x32xbf16> to vector<96x32xbf16>
    %26 = vector.extract_strided_slice %25 {offsets = [0, 0], sizes = [32, 32], strides = [1, 1]} : vector<96x32xbf16> to vector<32x32xbf16>
    %27 = vector.extract_strided_slice %25 {offsets = [32, 0], sizes = [64, 32], strides = [1, 1]} : vector<96x32xbf16> to vector<64x32xbf16>
    %28 = vector.extract_strided_slice %19 {offsets = [0, 0], sizes = [1, 32], strides = [1, 1]} : vector<2x32xf32> to vector<1x32xf32>
    %29 = arith.mulf %0, %0 : vector<16x32xf32>
    %cst_23 = arith.constant dense<0.000000e+00> : vector<16xf32>
    %30 = vector.multi_reduction <add>, %29, %cst_23 [1] : vector<16x32xf32> to vector<16xf32>
    %31 = vector.shape_cast %30 : vector<16xf32> to vector<16x1xf32>
    %cst_24 = arith.constant 3.200000e+01 : f32
    %32 = vector.broadcast %cst_24 : f32 to vector<16x1xf32>
    %33 = arith.divf %31, %32 : vector<16x1xf32>
    %cst_25 = arith.constant 9.99999974E-6 : f32
    %34 = vector.broadcast %cst_25 : f32 to vector<16x1xf32>
    %35 = arith.addf %33, %34 : vector<16x1xf32>
    %36 = math.rsqrt %35 : vector<16x1xf32>
    %37 = vector.broadcast %36 : vector<16x1xf32> to vector<16x32xf32>
    %38 = arith.mulf %0, %37 : vector<16x32xf32>
    %39 = vector.broadcast %28 : vector<1x32xf32> to vector<16x32xf32>
    %40 = arith.mulf %38, %39 : vector<16x32xf32>
    %41 = arith.truncf %40 : vector<16x32xf32> to vector<16x32xbf16>
    %cst_26 = arith.constant dense<0.000000e+00> : vector<16x160xf32>
    %42 = tpu.matmul %41, %21, %cst_26 {dimension_numbers = #tpu.dot_dimension_numbers<[1], [0], [0], [1], [0, 0, 1, 1], [], []>} : vector<16x32xbf16>, vector<32x160xbf16>, vector<16x160xf32> -> vector<16x160xf32>
    %43 = vector.extract_strided_slice %42 {offsets = [0, 0], sizes = [16, 32], strides = [1, 1]} : vector<16x160xf32> to vector<16x32xf32>
    %44 = vector.extract_strided_slice %42 {offsets = [0, 32], sizes = [16, 32], strides = [1, 1]} : vector<16x160xf32> to vector<16x32xf32>
    %45 = vector.extract_strided_slice %42 {offsets = [0, 64], sizes = [16, 32], strides = [1, 1]} : vector<16x160xf32> to vector<16x32xf32>
    %46 = vector.extract_strided_slice %42 {offsets = [0, 96], sizes = [16, 32], strides = [1, 1]} : vector<16x160xf32> to vector<16x32xf32>
    %47 = vector.extract_strided_slice %42 {offsets = [0, 128], sizes = [16, 32], strides = [1, 1]} : vector<16x160xf32> to vector<16x32xf32>
    %48 = arith.mulf %43, %15 : vector<16x32xf32>
    %49 = arith.mulf %44, %17 : vector<16x32xf32>
    %50 = arith.addf %48, %49 : vector<16x32xf32>
    %51 = arith.mulf %45, %15 : vector<16x32xf32>
    %52 = arith.mulf %46, %17 : vector<16x32xf32>
    %53 = arith.addf %51, %52 : vector<16x32xf32>
    %54 = vector.extract_strided_slice %50 {offsets = [0, 0], sizes = [8, 32], strides = [1, 1]} : vector<16x32xf32> to vector<8x32xf32>
    %55 = vector.shape_cast %54 : vector<8x32xf32> to vector<8x4x8xf32>
    %56 = vector.extract_strided_slice %53 {offsets = [0, 0], sizes = [8, 32], strides = [1, 1]} : vector<16x32xf32> to vector<8x32xf32>
    %57 = vector.shape_cast %56 : vector<8x32xf32> to vector<8x4x8xf32>
    %58 = vector.extract_strided_slice %47 {offsets = [0, 0], sizes = [8, 32], strides = [1, 1]} : vector<16x32xf32> to vector<8x32xf32>
    %59 = vector.shape_cast %58 : vector<8x32xf32> to vector<8x4x8xf32>
    "tpu.trace_start"() <{level = 10 : i32, message = "lhd,mhd->hlm"}> : () -> ()
    %cst_27 = arith.constant dense<0.000000e+00> : vector<4x8x8xf32>
    %60 = tpu.matmul %55, %57, %cst_27 {dimension_numbers = #tpu.dot_dimension_numbers<[2], [2], [0], [0], [0, 1, 0, 0, 1, 0], [1], [1]>} : vector<8x4x8xf32>, vector<8x4x8xf32>, vector<4x8x8xf32> -> vector<4x8x8xf32>
    "tpu.trace_stop"() : () -> ()
    %61 = vector.extract_strided_slice %13 {offsets = [0, 0, 0], sizes = [1, 8, 8], strides = [1, 1, 1]} : vector<2x8x8xf32> to vector<1x8x8xf32>
    %62 = vector.shape_cast %61 : vector<1x8x8xf32> to vector<8x8xf32>
    %63 = vector.shape_cast %62 : vector<8x8xf32> to vector<1x8x8xf32>
    %64 = vector.broadcast %63 : vector<1x8x8xf32> to vector<4x8x8xf32>
    %65 = arith.addf %60, %64 : vector<4x8x8xf32>
    %cst_28 = arith.constant dense<0xFF800000> : vector<4x8xf32>
    %66 = vector.multi_reduction <maximumf>, %65, %cst_28 [2] : vector<4x8x8xf32> to vector<4x8xf32>
    %67 = vector.shape_cast %66 : vector<4x8xf32> to vector<4x8x1xf32>
    %68 = vector.broadcast %67 : vector<4x8x1xf32> to vector<4x8x8xf32>
    %69 = arith.subf %65, %68 : vector<4x8x8xf32>
    %70 = math.exp %69 : vector<4x8x8xf32>
    %cst_29 = arith.constant dense<0.000000e+00> : vector<4x8xf32>
    %71 = vector.multi_reduction <add>, %70, %cst_29 [2] : vector<4x8x8xf32> to vector<4x8xf32>
    %72 = vector.shape_cast %71 : vector<4x8xf32> to vector<4x8x1xf32>
    %73 = tpu.reciprocal %72 {approx = true} : vector<4x8x1xf32> -> vector<4x8x1xf32>
    %74 = vector.broadcast %73 : vector<4x8x1xf32> to vector<4x8x8xf32>
    %75 = arith.mulf %70, %74 : vector<4x8x8xf32>
    "tpu.trace_start"() <{level = 10 : i32, message = "hlm,mhd->lhd"}> : () -> ()
    %cst_30 = arith.constant dense<0.000000e+00> : vector<4x8x8xf32>
    %76 = tpu.matmul %59, %75, %cst_30 {dimension_numbers = #tpu.dot_dimension_numbers<[0], [2], [2], [1], [0, 1, 0, 2, 1, 1], [1], [0]>} : vector<8x4x8xf32>, vector<4x8x8xf32>, vector<4x8x8xf32> -> vector<4x8x8xf32>
    %77 = tpu.transpose %76, [2, 0, 1] : vector<4x8x8xf32> -> vector<8x4x8xf32>
    "tpu.trace_stop"() : () -> ()
    %78 = vector.shape_cast %77 : vector<8x4x8xf32> to vector<8x32xf32>
    %79 = vector.extract_strided_slice %50 {offsets = [8, 0], sizes = [8, 32], strides = [1, 1]} : vector<16x32xf32> to vector<8x32xf32>
    %80 = vector.shape_cast %79 : vector<8x32xf32> to vector<8x4x8xf32>
    %81 = vector.extract_strided_slice %53 {offsets = [8, 0], sizes = [8, 32], strides = [1, 1]} : vector<16x32xf32> to vector<8x32xf32>
    %82 = vector.shape_cast %81 : vector<8x32xf32> to vector<8x4x8xf32>
    %83 = vector.extract_strided_slice %47 {offsets = [8, 0], sizes = [8, 32], strides = [1, 1]} : vector<16x32xf32> to vector<8x32xf32>
    %84 = vector.shape_cast %83 : vector<8x32xf32> to vector<8x4x8xf32>
    "tpu.trace_start"() <{level = 10 : i32, message = "lhd,mhd->hlm"}> : () -> ()
    %cst_31 = arith.constant dense<0.000000e+00> : vector<4x8x8xf32>
    %85 = tpu.matmul %80, %82, %cst_31 {dimension_numbers = #tpu.dot_dimension_numbers<[2], [2], [0], [0], [0, 1, 0, 0, 1, 0], [1], [1]>} : vector<8x4x8xf32>, vector<8x4x8xf32>, vector<4x8x8xf32> -> vector<4x8x8xf32>
    "tpu.trace_stop"() : () -> ()
    %86 = vector.extract_strided_slice %13 {offsets = [1, 0, 0], sizes = [1, 8, 8], strides = [1, 1, 1]} : vector<2x8x8xf32> to vector<1x8x8xf32>
    %87 = vector.shape_cast %86 : vector<1x8x8xf32> to vector<8x8xf32>
    %88 = vector.shape_cast %87 : vector<8x8xf32> to vector<1x8x8xf32>
    %89 = vector.broadcast %88 : vector<1x8x8xf32> to vector<4x8x8xf32>
    %90 = arith.addf %85, %89 : vector<4x8x8xf32>
    %cst_32 = arith.constant dense<0xFF800000> : vector<4x8xf32>
    %91 = vector.multi_reduction <maximumf>, %90, %cst_32 [2] : vector<4x8x8xf32> to vector<4x8xf32>
    %92 = vector.shape_cast %91 : vector<4x8xf32> to vector<4x8x1xf32>
    %93 = vector.broadcast %92 : vector<4x8x1xf32> to vector<4x8x8xf32>
    %94 = arith.subf %90, %93 : vector<4x8x8xf32>
    %95 = math.exp %94 : vector<4x8x8xf32>
    %cst_33 = arith.constant dense<0.000000e+00> : vector<4x8xf32>
    %96 = vector.multi_reduction <add>, %95, %cst_33 [2] : vector<4x8x8xf32> to vector<4x8xf32>
    %97 = vector.shape_cast %96 : vector<4x8xf32> to vector<4x8x1xf32>
    %98 = tpu.reciprocal %97 {approx = true} : vector<4x8x1xf32> -> vector<4x8x1xf32>
    %99 = vector.broadcast %98 : vector<4x8x1xf32> to vector<4x8x8xf32>
    %100 = arith.mulf %95, %99 : vector<4x8x8xf32>
    "tpu.trace_start"() <{level = 10 : i32, message = "hlm,mhd->lhd"}> : () -> ()
    %cst_34 = arith.constant dense<0.000000e+00> : vector<4x8x8xf32>
    %101 = tpu.matmul %84, %100, %cst_34 {dimension_numbers = #tpu.dot_dimension_numbers<[0], [2], [2], [1], [0, 1, 0, 2, 1, 1], [1], [0]>} : vector<8x4x8xf32>, vector<4x8x8xf32>, vector<4x8x8xf32> -> vector<4x8x8xf32>
    %102 = tpu.transpose %101, [2, 0, 1] : vector<4x8x8xf32> -> vector<8x4x8xf32>
    "tpu.trace_stop"() : () -> ()
    %103 = vector.shape_cast %102 : vector<8x4x8xf32> to vector<8x32xf32>
    %104 = tpu.concatenate %78, %103 in 0 : vector<8x32xf32>, vector<8x32xf32> -> vector<16x32xf32>
    %105 = arith.truncf %104 : vector<16x32xf32> to vector<16x32xbf16>
    %cst_35 = arith.constant dense<0.000000e+00> : vector<16x32xf32>
    %106 = tpu.matmul %105, %26, %cst_35 {dimension_numbers = #tpu.dot_dimension_numbers<[1], [0], [0], [1], [0, 0, 1, 1], [], []>} : vector<16x32xbf16>, vector<32x32xbf16>, vector<16x32xf32> -> vector<16x32xf32>
    %107 = arith.addf %0, %106 : vector<16x32xf32>
    %108 = vector.extract_strided_slice %19 {offsets = [1, 0], sizes = [1, 32], strides = [1, 1]} : vector<2x32xf32> to vector<1x32xf32>
    %109 = arith.mulf %107, %107 : vector<16x32xf32>
    %cst_36 = arith.constant dense<0.000000e+00> : vector<16xf32>
    %110 = vector.multi_reduction <add>, %109, %cst_36 [1] : vector<16x32xf32> to vector<16xf32>
    %111 = vector.shape_cast %110 : vector<16xf32> to vector<16x1xf32>
    %cst_37 = arith.constant 3.200000e+01 : f32
    %112 = vector.broadcast %cst_37 : f32 to vector<16x1xf32>
    %113 = arith.divf %111, %112 : vector<16x1xf32>
    %cst_38 = arith.constant 9.99999974E-6 : f32
    %114 = vector.broadcast %cst_38 : f32 to vector<16x1xf32>
    %115 = arith.addf %113, %114 : vector<16x1xf32>
    %116 = math.rsqrt %115 : vector<16x1xf32>
    %117 = vector.broadcast %116 : vector<16x1xf32> to vector<16x32xf32>
    %118 = arith.mulf %107, %117 : vector<16x32xf32>
    %119 = vector.broadcast %108 : vector<1x32xf32> to vector<16x32xf32>
    %120 = arith.mulf %118, %119 : vector<16x32xf32>
    %121 = arith.truncf %120 : vector<16x32xf32> to vector<16x32xbf16>
    %cst_39 = arith.constant dense<0.000000e+00> : vector<16x128xf32>
    %122 = tpu.matmul %121, %23, %cst_39 {dimension_numbers = #tpu.dot_dimension_numbers<[1], [0], [0], [1], [0, 0, 1, 1], [], []>} : vector<16x32xbf16>, vector<32x128xbf16>, vector<16x128xf32> -> vector<16x128xf32>
    %123 = vector.extract_strided_slice %122 {offsets = [0, 0], sizes = [16, 64], strides = [1, 1]} : vector<16x128xf32> to vector<16x64xf32>
    %124 = vector.extract_strided_slice %122 {offsets = [0, 64], sizes = [16, 64], strides = [1, 1]} : vector<16x128xf32> to vector<16x64xf32>
    %125 = arith.negf %123 : vector<16x64xf32>
    %126 = math.exp %125 : vector<16x64xf32>
    %cst_40 = arith.constant 1.000000e+00 : f32
    %127 = vector.broadcast %cst_40 : f32 to vector<16x64xf32>
    %128 = arith.addf %127, %126 : vector<16x64xf32>
    %129 = arith.divf %127, %128 : vector<16x64xf32>
    %130 = arith.mulf %123, %129 : vector<16x64xf32>
    %131 = arith.mulf %130, %124 : vector<16x64xf32>
    %132 = arith.truncf %131 : vector<16x64xf32> to vector<16x64xbf16>
    %cst_41 = arith.constant dense<0.000000e+00> : vector<16x32xf32>
    %133 = tpu.matmul %132, %27, %cst_41 {dimension_numbers = #tpu.dot_dimension_numbers<[1], [0], [0], [1], [0, 0, 1, 1], [], []>} : vector<16x64xbf16>, vector<64x32xbf16>, vector<16x32xf32> -> vector<16x32xf32>
    %134 = arith.addf %107, %133 : vector<16x32xf32>
    %c1_42 = arith.constant 1 : index
    %c0_43 = arith.constant 0 : index
    %c0_44 = arith.constant 0 : index
    %135 = vector.load %arg2[%c1_42, %c0_43, %c0_44] : memref<2x2x32xf32, #tpu.memory_space<vmem>>, vector<1x2x32xf32>
    %136 = vector.shape_cast %135 : vector<1x2x32xf32> to vector<2x32xf32>
    %c1_45 = arith.constant 1 : index
    %c0_46 = arith.constant 0 : index
    %c0_47 = arith.constant 0 : index
    %137 = vector.load %arg3[%c1_45, %c0_46, %c0_47] : memref<2x32x160xbf16, #tpu.memory_space<vmem>>, vector<1x32x160xbf16>
    %138 = vector.shape_cast %137 : vector<1x32x160xbf16> to vector<32x160xbf16>
    %c1_48 = arith.constant 1 : index
    %c0_49 = arith.constant 0 : index
    %c0_50 = arith.constant 0 : index
    %139 = vector.load %arg4[%c1_48, %c0_49, %c0_50] : memref<2x32x128xbf16, #tpu.memory_space<vmem>>, vector<1x32x128xbf16>
    %140 = vector.shape_cast %139 : vector<1x32x128xbf16> to vector<32x128xbf16>
    %c1_51 = arith.constant 1 : index
    %c0_52 = arith.constant 0 : index
    %c0_53 = arith.constant 0 : index
    %141 = vector.load %arg5[%c1_51, %c0_52, %c0_53] : memref<2x96x32xbf16, #tpu.memory_space<vmem>>, vector<1x96x32xbf16>
    %142 = vector.shape_cast %141 : vector<1x96x32xbf16> to vector<96x32xbf16>
    %143 = vector.extract_strided_slice %142 {offsets = [0, 0], sizes = [32, 32], strides = [1, 1]} : vector<96x32xbf16> to vector<32x32xbf16>
    %144 = vector.extract_strided_slice %142 {offsets = [32, 0], sizes = [64, 32], strides = [1, 1]} : vector<96x32xbf16> to vector<64x32xbf16>
    %145 = vector.extract_strided_slice %136 {offsets = [0, 0], sizes = [1, 32], strides = [1, 1]} : vector<2x32xf32> to vector<1x32xf32>
    %146 = arith.mulf %134, %134 : vector<16x32xf32>
    %cst_54 = arith.constant dense<0.000000e+00> : vector<16xf32>
    %147 = vector.multi_reduction <add>, %146, %cst_54 [1] : vector<16x32xf32> to vector<16xf32>
    %148 = vector.shape_cast %147 : vector<16xf32> to vector<16x1xf32>
    %cst_55 = arith.constant 3.200000e+01 : f32
    %149 = vector.broadcast %cst_55 : f32 to vector<16x1xf32>
    %150 = arith.divf %148, %149 : vector<16x1xf32>
    %cst_56 = arith.constant 9.99999974E-6 : f32
    %151 = vector.broadcast %cst_56 : f32 to vector<16x1xf32>
    %152 = arith.addf %150, %151 : vector<16x1xf32>
    %153 = math.rsqrt %152 : vector<16x1xf32>
    %154 = vector.broadcast %153 : vector<16x1xf32> to vector<16x32xf32>
    %155 = arith.mulf %134, %154 : vector<16x32xf32>
    %156 = vector.broadcast %145 : vector<1x32xf32> to vector<16x32xf32>
    %157 = arith.mulf %155, %156 : vector<16x32xf32>
    %158 = arith.truncf %157 : vector<16x32xf32> to vector<16x32xbf16>
    %cst_57 = arith.constant dense<0.000000e+00> : vector<16x160xf32>
    %159 = tpu.matmul %158, %138, %cst_57 {dimension_numbers = #tpu.dot_dimension_numbers<[1], [0], [0], [1], [0, 0, 1, 1], [], []>} : vector<16x32xbf16>, vector<32x160xbf16>, vector<16x160xf32> -> vector<16x160xf32>
    %160 = vector.extract_strided_slice %159 {offsets = [0, 0], sizes = [16, 32], strides = [1, 1]} : vector<16x160xf32> to vector<16x32xf32>
    %161 = vector.extract_strided_slice %159 {offsets = [0, 32], sizes = [16, 32], strides = [1, 1]} : vector<16x160xf32> to vector<16x32xf32>
    %162 = vector.extract_strided_slice %159 {offsets = [0, 64], sizes = [16, 32], strides = [1, 1]} : vector<16x160xf32> to vector<16x32xf32>
    %163 = vector.extract_strided_slice %159 {offsets = [0, 96], sizes = [16, 32], strides = [1, 1]} : vector<16x160xf32> to vector<16x32xf32>
    %164 = vector.extract_strided_slice %159 {offsets = [0, 128], sizes = [16, 32], strides = [1, 1]} : vector<16x160xf32> to vector<16x32xf32>
    %165 = arith.mulf %160, %15 : vector<16x32xf32>
    %166 = arith.mulf %161, %17 : vector<16x32xf32>
    %167 = arith.addf %165, %166 : vector<16x32xf32>
    %168 = arith.mulf %162, %15 : vector<16x32xf32>
    %169 = arith.mulf %163, %17 : vector<16x32xf32>
    %170 = arith.addf %168, %169 : vector<16x32xf32>
    %171 = vector.extract_strided_slice %167 {offsets = [0, 0], sizes = [8, 32], strides = [1, 1]} : vector<16x32xf32> to vector<8x32xf32>
    %172 = vector.shape_cast %171 : vector<8x32xf32> to vector<8x4x8xf32>
    %173 = vector.extract_strided_slice %170 {offsets = [0, 0], sizes = [8, 32], strides = [1, 1]} : vector<16x32xf32> to vector<8x32xf32>
    %174 = vector.shape_cast %173 : vector<8x32xf32> to vector<8x4x8xf32>
    %175 = vector.extract_strided_slice %164 {offsets = [0, 0], sizes = [8, 32], strides = [1, 1]} : vector<16x32xf32> to vector<8x32xf32>
    %176 = vector.shape_cast %175 : vector<8x32xf32> to vector<8x4x8xf32>
    "tpu.trace_start"() <{level = 10 : i32, message = "lhd,mhd->hlm"}> : () -> ()
    %cst_58 = arith.constant dense<0.000000e+00> : vector<4x8x8xf32>
    %177 = tpu.matmul %172, %174, %cst_58 {dimension_numbers = #tpu.dot_dimension_numbers<[2], [2], [0], [0], [0, 1, 0, 0, 1, 0], [1], [1]>} : vector<8x4x8xf32>, vector<8x4x8xf32>, vector<4x8x8xf32> -> vector<4x8x8xf32>
    "tpu.trace_stop"() : () -> ()
    %178 = vector.extract_strided_slice %13 {offsets = [0, 0, 0], sizes = [1, 8, 8], strides = [1, 1, 1]} : vector<2x8x8xf32> to vector<1x8x8xf32>
    %179 = vector.shape_cast %178 : vector<1x8x8xf32> to vector<8x8xf32>
    %180 = vector.shape_cast %179 : vector<8x8xf32> to vector<1x8x8xf32>
    %181 = vector.broadcast %180 : vector<1x8x8xf32> to vector<4x8x8xf32>
    %182 = arith.addf %177, %181 : vector<4x8x8xf32>
    %cst_59 = arith.constant dense<0xFF800000> : vector<4x8xf32>
    %183 = vector.multi_reduction <maximumf>, %182, %cst_59 [2] : vector<4x8x8xf32> to vector<4x8xf32>
    %184 = vector.shape_cast %183 : vector<4x8xf32> to vector<4x8x1xf32>
    %185 = vector.broadcast %184 : vector<4x8x1xf32> to vector<4x8x8xf32>
    %186 = arith.subf %182, %185 : vector<4x8x8xf32>
    %187 = math.exp %186 : vector<4x8x8xf32>
    %cst_60 = arith.constant dense<0.000000e+00> : vector<4x8xf32>
    %188 = vector.multi_reduction <add>, %187, %cst_60 [2] : vector<4x8x8xf32> to vector<4x8xf32>
    %189 = vector.shape_cast %188 : vector<4x8xf32> to vector<4x8x1xf32>
    %190 = tpu.reciprocal %189 {approx = true} : vector<4x8x1xf32> -> vector<4x8x1xf32>
    %191 = vector.broadcast %190 : vector<4x8x1xf32> to vector<4x8x8xf32>
    %192 = arith.mulf %187, %191 : vector<4x8x8xf32>
    "tpu.trace_start"() <{level = 10 : i32, message = "hlm,mhd->lhd"}> : () -> ()
    %cst_61 = arith.constant dense<0.000000e+00> : vector<4x8x8xf32>
    %193 = tpu.matmul %176, %192, %cst_61 {dimension_numbers = #tpu.dot_dimension_numbers<[0], [2], [2], [1], [0, 1, 0, 2, 1, 1], [1], [0]>} : vector<8x4x8xf32>, vector<4x8x8xf32>, vector<4x8x8xf32> -> vector<4x8x8xf32>
    %194 = tpu.transpose %193, [2, 0, 1] : vector<4x8x8xf32> -> vector<8x4x8xf32>
    "tpu.trace_stop"() : () -> ()
    %195 = vector.shape_cast %194 : vector<8x4x8xf32> to vector<8x32xf32>
    %196 = vector.extract_strided_slice %167 {offsets = [8, 0], sizes = [8, 32], strides = [1, 1]} : vector<16x32xf32> to vector<8x32xf32>
    %197 = vector.shape_cast %196 : vector<8x32xf32> to vector<8x4x8xf32>
    %198 = vector.extract_strided_slice %170 {offsets = [8, 0], sizes = [8, 32], strides = [1, 1]} : vector<16x32xf32> to vector<8x32xf32>
    %199 = vector.shape_cast %198 : vector<8x32xf32> to vector<8x4x8xf32>
    %200 = vector.extract_strided_slice %164 {offsets = [8, 0], sizes = [8, 32], strides = [1, 1]} : vector<16x32xf32> to vector<8x32xf32>
    %201 = vector.shape_cast %200 : vector<8x32xf32> to vector<8x4x8xf32>
    "tpu.trace_start"() <{level = 10 : i32, message = "lhd,mhd->hlm"}> : () -> ()
    %cst_62 = arith.constant dense<0.000000e+00> : vector<4x8x8xf32>
    %202 = tpu.matmul %197, %199, %cst_62 {dimension_numbers = #tpu.dot_dimension_numbers<[2], [2], [0], [0], [0, 1, 0, 0, 1, 0], [1], [1]>} : vector<8x4x8xf32>, vector<8x4x8xf32>, vector<4x8x8xf32> -> vector<4x8x8xf32>
    "tpu.trace_stop"() : () -> ()
    %203 = vector.extract_strided_slice %13 {offsets = [1, 0, 0], sizes = [1, 8, 8], strides = [1, 1, 1]} : vector<2x8x8xf32> to vector<1x8x8xf32>
    %204 = vector.shape_cast %203 : vector<1x8x8xf32> to vector<8x8xf32>
    %205 = vector.shape_cast %204 : vector<8x8xf32> to vector<1x8x8xf32>
    %206 = vector.broadcast %205 : vector<1x8x8xf32> to vector<4x8x8xf32>
    %207 = arith.addf %202, %206 : vector<4x8x8xf32>
    %cst_63 = arith.constant dense<0xFF800000> : vector<4x8xf32>
    %208 = vector.multi_reduction <maximumf>, %207, %cst_63 [2] : vector<4x8x8xf32> to vector<4x8xf32>
    %209 = vector.shape_cast %208 : vector<4x8xf32> to vector<4x8x1xf32>
    %210 = vector.broadcast %209 : vector<4x8x1xf32> to vector<4x8x8xf32>
    %211 = arith.subf %207, %210 : vector<4x8x8xf32>
    %212 = math.exp %211 : vector<4x8x8xf32>
    %cst_64 = arith.constant dense<0.000000e+00> : vector<4x8xf32>
    %213 = vector.multi_reduction <add>, %212, %cst_64 [2] : vector<4x8x8xf32> to vector<4x8xf32>
    %214 = vector.shape_cast %213 : vector<4x8xf32> to vector<4x8x1xf32>
    %215 = tpu.reciprocal %214 {approx = true} : vector<4x8x1xf32> -> vector<4x8x1xf32>
    %216 = vector.broadcast %215 : vector<4x8x1xf32> to vector<4x8x8xf32>
    %217 = arith.mulf %212, %216 : vector<4x8x8xf32>
    "tpu.trace_start"() <{level = 10 : i32, message = "hlm,mhd->lhd"}> : () -> ()
    %cst_65 = arith.constant dense<0.000000e+00> : vector<4x8x8xf32>
    %218 = tpu.matmul %201, %217, %cst_65 {dimension_numbers = #tpu.dot_dimension_numbers<[0], [2], [2], [1], [0, 1, 0, 2, 1, 1], [1], [0]>} : vector<8x4x8xf32>, vector<4x8x8xf32>, vector<4x8x8xf32> -> vector<4x8x8xf32>
    %219 = tpu.transpose %218, [2, 0, 1] : vector<4x8x8xf32> -> vector<8x4x8xf32>
    "tpu.trace_stop"() : () -> ()
    %220 = vector.shape_cast %219 : vector<8x4x8xf32> to vector<8x32xf32>
    %221 = tpu.concatenate %195, %220 in 0 : vector<8x32xf32>, vector<8x32xf32> -> vector<16x32xf32>
    %222 = arith.truncf %221 : vector<16x32xf32> to vector<16x32xbf16>
    %cst_66 = arith.constant dense<0.000000e+00> : vector<16x32xf32>
    %223 = tpu.matmul %222, %143, %cst_66 {dimension_numbers = #tpu.dot_dimension_numbers<[1], [0], [0], [1], [0, 0, 1, 1], [], []>} : vector<16x32xbf16>, vector<32x32xbf16>, vector<16x32xf32> -> vector<16x32xf32>
    %224 = arith.addf %134, %223 : vector<16x32xf32>
    %225 = vector.extract_strided_slice %136 {offsets = [1, 0], sizes = [1, 32], strides = [1, 1]} : vector<2x32xf32> to vector<1x32xf32>
    %226 = arith.mulf %224, %224 : vector<16x32xf32>
    %cst_67 = arith.constant dense<0.000000e+00> : vector<16xf32>
    %227 = vector.multi_reduction <add>, %226, %cst_67 [1] : vector<16x32xf32> to vector<16xf32>
    %228 = vector.shape_cast %227 : vector<16xf32> to vector<16x1xf32>
    %cst_68 = arith.constant 3.200000e+01 : f32
    %229 = vector.broadcast %cst_68 : f32 to vector<16x1xf32>
    %230 = arith.divf %228, %229 : vector<16x1xf32>
    %cst_69 = arith.constant 9.99999974E-6 : f32
    %231 = vector.broadcast %cst_69 : f32 to vector<16x1xf32>
    %232 = arith.addf %230, %231 : vector<16x1xf32>
    %233 = math.rsqrt %232 : vector<16x1xf32>
    %234 = vector.broadcast %233 : vector<16x1xf32> to vector<16x32xf32>
    %235 = arith.mulf %224, %234 : vector<16x32xf32>
    %236 = vector.broadcast %225 : vector<1x32xf32> to vector<16x32xf32>
    %237 = arith.mulf %235, %236 : vector<16x32xf32>
    %238 = arith.truncf %237 : vector<16x32xf32> to vector<16x32xbf16>
    %cst_70 = arith.constant dense<0.000000e+00> : vector<16x128xf32>
    %239 = tpu.matmul %238, %140, %cst_70 {dimension_numbers = #tpu.dot_dimension_numbers<[1], [0], [0], [1], [0, 0, 1, 1], [], []>} : vector<16x32xbf16>, vector<32x128xbf16>, vector<16x128xf32> -> vector<16x128xf32>
    %240 = vector.extract_strided_slice %239 {offsets = [0, 0], sizes = [16, 64], strides = [1, 1]} : vector<16x128xf32> to vector<16x64xf32>
    %241 = vector.extract_strided_slice %239 {offsets = [0, 64], sizes = [16, 64], strides = [1, 1]} : vector<16x128xf32> to vector<16x64xf32>
    %242 = arith.negf %240 : vector<16x64xf32>
    %243 = math.exp %242 : vector<16x64xf32>
    %cst_71 = arith.constant 1.000000e+00 : f32
    %244 = vector.broadcast %cst_71 : f32 to vector<16x64xf32>
    %245 = arith.addf %244, %243 : vector<16x64xf32>
    %246 = arith.divf %244, %245 : vector<16x64xf32>
    %247 = arith.mulf %240, %246 : vector<16x64xf32>
    %248 = arith.mulf %247, %241 : vector<16x64xf32>
    %249 = arith.truncf %248 : vector<16x64xf32> to vector<16x64xbf16>
    %cst_72 = arith.constant dense<0.000000e+00> : vector<16x32xf32>
    %250 = tpu.matmul %249, %144, %cst_72 {dimension_numbers = #tpu.dot_dimension_numbers<[1], [0], [0], [1], [0, 0, 1, 1], [], []>} : vector<16x64xbf16>, vector<64x32xbf16>, vector<16x32xf32> -> vector<16x32xf32>
    %251 = arith.addf %224, %250 : vector<16x32xf32>
    %c0_73 = arith.constant 0 : index
    %c0_74 = arith.constant 0 : index
    %252 = vector.load %arg7[%c0_73, %c0_74] : memref<16x32xf32, #tpu.memory_space<vmem>>, vector<16x32xf32>
    tpu.vector_store %arg7[%c0_73, %c0_74], %251 {strides = array<i32>} : memref<16x32xf32, #tpu.memory_space<vmem>>, vector<16x32xf32>,
    return
  }
}

</mosaic_0001>

<bundles_post_ra>
// kernel: tpu_custom_call.1
= control target key start
LH: loop header
LB: loop body
LE: loop exit
PB: predicated region body
PF: predicated region fallthrough
CT: control target
= control target key end

     0   :  { %12 = vsyncpa [#allocation3], 0  ;;  %s7156_s0 = inlined_call_operand.hbm [shape: f32[16,32], index: 0, kind: input, shape index: {}]   ;;  %s7157_s1 = inlined_call_operand.hbm [shape: f32[2,1,8], index: 1, kind: input, shape index: {}]   ;;  %s7158_s2 = inlined_call_operand.hbm [shape: f32[2,2,32], index: 2, kind: input, shape index: {}]   ;;  %s7159_s3 = inlined_call_operand.vmem [shape: bf16[2,32,160], index: 3, kind: input, shape index: {}]   ;;  %s7160_s4 = inlined_call_operand.vmem [shape: bf16[2,32,128], index: 4, kind: input, shape index: {}]   ;;  %s7161_s5 = inlined_call_operand.vmem [shape: bf16[2,96,32], index: 5, kind: input, shape index: {}]   ;;  %s7162_s6 = inlined_call_operand.vmem [shape: f32[2,16,32], index: 6, kind: input, shape index: {}]   ;;  %s7163_s7 = inlined_call_operand.hbm [shape: f32[16,32], index: 7, kind: output, shape index: {}]  }
   0x1   :  { %13 = vsyncpa [#allocation6], 0 }
   0x2   :  { %14 = vsyncpa [#allocation4], 0  ;;  %s6407_s24 = smov [#allocation5]  }
   0x3   :  { %s32_s25 = sshll.u32 %s6407_s24, 4  ;;  %s33_s25 = int_to_ptr.vmem [resolvable:$true] %s32_s25 }
   0x4   :  { %s6329_s26 = scalar_lea.vmem %s33_s25, 32  ;;  %p6334_p1 = scmp.lt.s32.totalorder %s33_s25, %s33_s25 }
   0x5   :  { %p6330_p0 = scmp.ne.s32.totalorder %s33_s25, %s6329_s26  ;;  %p6335_p2 = scmp.lt.s32.totalorder %s6329_s26, %s6329_s26 }
   0x7   :  { %p6336_p3 = por %p6335_p2, %p6334_p1 }
   0x9   :  { %p6337_p4 = pnand %p6336_p3, %p6330_p0 }
   0xb   :  { %6340 = shalt.err (!%p6337_p4)
}
   0xc   :  { %s6408_s27 = smov 16   ;;  %s6409_s28 = smov 1  }
   0xd   :  { %38 = dma.hbm_to_vmem [thread:$0]  %s7157_s1, 32, %s33_s25, [#allocation6], %s6408_s27, %s6408_s27, %s6409_s28  }
   0xe   :  { %s6410_s8 = smov [#allocation2]  }
   0xf   :  { %s20_s9 = sshll.u32 %s6410_s8, 4  ;;  %s21_s9 = int_to_ptr.vmem [resolvable:$true] %s20_s9 }
  0x10   :  { %s6349_s10 = scalar_lea.vmem %s21_s9, 256  ;;  %p6354_p6 = scmp.lt.s32.totalorder %s21_s9, %s21_s9 }
  0x11   :  { %p6350_p5 = scmp.ne.s32.totalorder %s21_s9, %s6349_s10  ;;  %p6355_p7 = scmp.lt.s32.totalorder %s6349_s10, %s6349_s10 }
  0x13   :  { %p6356_p8 = por %p6355_p7, %p6354_p6 }
  0x15   :  { %p6357_p9 = pnand %p6356_p8, %p6350_p5 }
  0x17   :  { %6360 = shalt.err (!%p6357_p9)
}
  0x18   :  { %s6411_s11 = smov 128   ;;  %s6412_s12 = smov 8  }
  0x19   :  { %26 = dma.hbm_to_vmem [thread:$0]  %s7156_s0, 256, %s21_s9, [#allocation3], %s6411_s11, %s6411_s11, %s6412_s12  }
  0x1a   :  { %s6413_s1 = smov [#allocation7]  }
  0x1b   :  { %s44_s15 = sshll.u32 %s6413_s1, 4  ;;  %s45_s15 = int_to_ptr.vmem [resolvable:$true] %s44_s15 }
  0x1c   :  { %s6369_s16 = scalar_lea.vmem %s45_s15, 64  ;;  %p6374_p11 = scmp.lt.s32.totalorder %s45_s15, %s45_s15 }
  0x1d   :  { %p6370_p10 = scmp.ne.s32.totalorder %s45_s15, %s6369_s16  ;;  %p6375_p12 = scmp.lt.s32.totalorder %s6369_s16, %s6369_s16 }
  0x1f   :  { %p6376_p13 = por %p6375_p12, %p6374_p11 }
  0x21   :  { %p6377_p0 = pnand %p6376_p13, %p6370_p10 }
  0x23   :  { %6380 = shalt.err (!%p6377_p0)
}
  0x24   :  { %s6414_s17 = smov 32   ;;  %s6415_s18 = smov 2  }
  0x25   :  { %50 = dma.hbm_to_vmem [thread:$0]  %s7158_s2, 64, %s45_s15, [#allocation6], %s6414_s17, %s6414_s17, %s6415_s18  }
  0x26   :  { %6401 = dma.done.wait [#allocation3], 256  }
  0x27   :  { %6402 = vsyncadd [#allocation3], 4294967040 }
  0x28   :  { %6403 = dma.done.wait [#allocation6], 96  }
  0x29   :  { %6404 = vsyncadd [#allocation6], 4294967200  ;;  %v69_v0 = vld [vmem:[#allocation2] sm:$0xff]  ;;  %vm126_vm0 = vcmask 261120   ;;  %v70_v1 = vld [vmem:[#allocation2 + $0x8] sm:$0xff]  ;;  %v71_v9 = vlaneseq  ;;  %v6416_v14 = vmov 0  }
  0x2a   :  { %v124_v2 = vmul.f32 %v69_v0, %v69_v0  ;;  %v125_v3 = vmul.f32 %v70_v1, %v70_v1  ;;  %v6193_v6 = vld [vmem:[%s7159_s3 + $0x14] ss:$8 sps:$4 sm:$0xff]   ;;  %v6195_v7 = vld [vmem:[%s7159_s3 + $0x10] ss:$8 sps:$4 sm:$0xff]   ;;  %v6196_v8 = vld [vmem:[%s7159_s3 + $0x4] ss:$8 sps:$4 sm:$0xff]   ;;  %204 = vmatprep.mubr.bf16.mxu0 %v6416_v14 }
  0x2b   :  { %v77_v10 = vld [vmem:[#allocation5 + $0x1] sm:$0x1]  ;;  %184 = vmatprep.subr.bf16.mxu0 %v6193_v6  ;;  %v6496_v11 = vshrl.u32 %v71_v9, 7  ;;  %v6498_v12 = vand.u32 127, %v71_v9  ;;  %v6198_v13 = vld [vmem:[%s7159_s3] ss:$8 sps:$4 sm:$0xff]  }
  0x2c   :  { %v127_v4 = vsel %vm126_vm0, %v124_v2, 0.0  ;;  %v130_v5 = vsel %vm126_vm0, %v125_v3, 0.0  ;;  %vm79_vm1 = vcmp.gt.f32.partialorder %v77_v10, 0.5  ;;  %185 = vmatpush1.bf16.msra.mxu0 %v6195_v7  ;;  %v6417_v18 = vmov -1e+30   ;;  %v5725_v20 = vld [vmem:[%s7162_s6 + $0x10] sm:$0xff] }
  0x2d   :  { %128 = vadd.xlane.f32.xlu0 %v127_v4  ;;  %186 = vmatprep.subr.bf16.mxu0 %v6196_v8  ;;  %vm75_vm2 = vcmp.ge.s32.totalorder %v6496_v11, %v6498_v12  ;;  %v83_v15 = vsel %vm79_vm1, 1, %v6416_v14  ;;  %v6507_v16 = vsub.s32 0, %v6496_v11  ;;  %s6418_s30 = smov 96   ;;  %v98_v21 = vld [vmem:[%s7162_s6] sm:$0xff]  ;;  %s6419_s10 = smov 64   ;;  %v6423_v52 = vmov 0.0  }
  0x2e   :  { %247 = vrot.lane.b32.xlu1 %v5725_v20, %s6418_s30  ;;  %v6526_v29 = vld [vmem:[#allocation7] sm:$0x3]  ;;  %s6420_s13 = smov 120   ;;  %s6421_s14 = smov 112   ;;  %5925 = vmatprep.subr.mxu1 %v6423_v52  ;;  %vm6424_vm5 = vmmov 0   ;;  %v6561_v57 = vld [vmem:[%s7162_s6 + $0x8] sm:$0xff] }
  0x2f   :  { %v91_v17 = vrot.slane %v83_v15, %v6507_v16  ;;  %v145_v31 = vrot.slane %v6526_v29, %v6507_v16  ;;  %s6422_s1 = smov 104   ;;  %5927 = vmatprep.mubr.msk.f32.mxu1 %vm6424_vm5, %v6423_v52  ;;  %v5726_v58 = vld [vmem:[%s7162_s6 + $0x18] sm:$0xff]  ;;  %vm429_vm6 = vcmask 64512   ;;  %v76_v6 = vld [vmem:[#allocation5] sm:$0x1]  ;;  %s6427_s2 = smov 24  }
  0x30   :  { %187 = vmatpush1.bf16.msra.mxu0 %v6198_v13  ;;  %vm78_vm7 = vcmp.gt.f32.partialorder %v76_v6, 0.5  ;;  %vm1471_vm10 = vcmask 130048   ;;  %vm1473_vm11 = vcmask 195584   ;;  %vm2869_vm12 = vcmask 523264  }
  0x31   :  { %131 = vadd.xlane.f32.xlu0 %v130_v5  ;;  %vm93_vm3 = vcmp.eq.s32.totalorder %v91_v17, 1  ;;  %5945 = vmatprep.subr.mxu0 %v6423_v52  ;;  %v82_v7 = vsel %vm78_vm7, 1, %v6416_v14 }
  0x32   :  { %vm95_vm4 = vmand %vm75_vm2, %vm93_vm3  ;;  %239 = vrot.lane.b32.xlu1 %v98_v21, %s6419_s10  ;;  %v87_v8 = vrot.slane %v82_v7, %v6507_v16 }
  0x33   :  { %v6515_v19 = vsel %vm95_vm4, 0.0, %v6417_v18 }
  0x34   :  { %vm92_vm8 = vcmp.eq.s32.totalorder %v87_v8, 1 }
  0x35   :  { %vm94_vm9 = vmand %vm75_vm2, %vm92_vm8 }
  0x36   :  { %219 = vrot.lane.b32.xlu1 %v5725_v20, %s6414_s17  ;;  %v6597_v9 = vsel %vm94_vm9, 0.0, %v6417_v18 }
  0xa0   :  { %v6531_v37 = vpop.permute.xlu1 %247 }
  0xa4   :  { %v6535_v40 = vpop.permute.xlu1 %239 }
  0xa8   :  { %v6540_v44 = vpop.permute.xlu1 %219 }
  0xb6   :  { %v129_v22 = vpop.xlane.xlu0 %128 }
  0xb7   :  { %v134_v23 = vmul.f32 0.03125, %v129_v22 }
  0xb9   :  { %v136_v24 = vadd.f32 1e-05, %v134_v23 }
  0xba   :  { %v132_v25 = vpop.xlane.xlu0 %131 }
  0xbb   :  { %6221 = vrsqrt.f32 %v136_v24  ;;  %v135_v26 = vmul.f32 0.03125, %v132_v25 }
  0xbd   :  { %v137_v27 = vadd.f32 1e-05, %v135_v26 }
  0xbf   :  { %6223 = vrsqrt.f32 %v137_v27 }
  0xc8   :  { %v6222_v28 = vpop.eup %6221 }
  0xc9   :  { %v140_v30 = vmul.f32 %v6222_v28, %v69_v0 }
  0xcb   :  { %v146_v34 = vmul.f32 %v145_v31, %v140_v30 }
  0xcc   :  { %v6224_v32 = vpop.eup %6223 }
  0xcd   :  { %v141_v33 = vmul.f32 %v6224_v32, %v70_v1 }
  0xcf   :  { %v147_v35 = vmul.f32 %v145_v31, %v141_v33 }
  0xd1   :  { %v148_v36 = vpack.c.bf16 %v147_v35, %v146_v34 }
  0xd3   :  { %5731 = vmatmul.mubr.msk.bf16.vlgmr.msra.gmra.mxu0 %vm126_vm0, %v148_v36 }
  0xd4   :  { %5947 = vmatprep.mubr.msk.f32.mxu0 %vm6424_vm5, %v6423_v52 }
 0x193   :  { %v206_v38 = vpop.f32.mrf.mxu0 }
 0x194   :  { %v253_v39 = vmul.f32 %v6531_v37, %v206_v38  ;;  %v245_v41 = vmul.f32 %v6535_v40, %v206_v38  ;;  %v225_v45 = vmul.f32 %v6540_v44, %v206_v38  ;;  %v215_v49 = vmul.f32 %v206_v38, %v98_v21 }
 0x195   :  { %v6585_v2 = vpop.f32.mrf.mxu0 }
 0x196   :  { %257 = vrot.lane.b32.xlu0 %v253_v39, %s6418_s30 }
 0x197   :  { %v210_v3 = vpop.f32.mrf.mxu0 }
 0x208   :  { %v258_v42 = vpop.permute.xlu0 %257 }
 0x209   :  { %v263_v43 = vadd.f32 %v258_v42, %v245_v41 }
 0x20b   :  { %273 = vrot.lane.b32.xlu1 %v263_v43, %s6420_s13 }
 0x20f   :  { %275 = vrot.lane.b32.xlu1 %v263_v43, %s6421_s14 }
 0x213   :  { %277 = vrot.lane.b32.xlu1 %v263_v43, %s6422_s1 }
 0x217   :  { %229 = vrot.lane.b32.xlu1 %v225_v45, %s6418_s30 }
 0x21b   :  { %289 = vrot.lane.b32.xlu1 %v263_v43, %s6419_s10 }
 0x27d   :  { %v274_v46 = vpop.permute.xlu1 %273 }
 0x27e   :  { %291 = vrot.lane.b32.xlu0 %v274_v46, %s6419_s10  ;;  %v216_v46 = vmul.f32 %v210_v3, %v6561_v57 }
 0x281   :  { %v276_v47 = vpop.permute.xlu1 %275 }
 0x282   :  { %293 = vrot.lane.b32.xlu1 %v276_v47, %s6419_s10 }
 0x285   :  { %v278_v48 = vpop.permute.xlu1 %277 }
 0x286   :  { %295 = vrot.lane.b32.xlu0 %v278_v48, %s6419_s10 }
 0x289   :  { %v230_v50 = vpop.permute.xlu1 %229 }
 0x28a   :  { %v235_v51 = vadd.f32 %v230_v50, %v215_v49 }
 0x28c   :  { %268 = vrot.lane.b32.xlu0 %v235_v51, %s6421_s14  ;;  %266 = vrot.lane.b32.xlu1 %v235_v51, %s6420_s13 }
 0x28d   :  { %v290_v53 = vpop.permute.xlu1 %289 }
 0x290   :  { %270 = vrot.lane.b32.xlu1 %v235_v51, %s6422_s1 }
 0x2aa   :  { %301 = vxpose.xlu0.b32.start.end [1/1] (short) (narrow) %v290_v53, 8 }
 0x2f0   :  { %v292_v54 = vpop.permute.xlu0 %291 }
 0x2f1   :  { %333 = vxpose.xlu1.b32.start.end [1/1] (short) (narrow) %v292_v54, 8 }
 0x2f4   :  { %v294_v55 = vpop.permute.xlu1 %293 }
 0x2f5   :  { %365 = vxpose.xlu0.b32.start.end [1/1] (short) (narrow) %v294_v55, 8 }
 0x2f8   :  { %v296_v56 = vpop.permute.xlu0 %295 }
 0x2f9   :  { %397 = vxpose.xlu0.b32.start.end [1/1] (short) (narrow) %v296_v56, 8 }
 0x2fe   :  { %v269_v59 = vpop.permute.xlu0 %268  ;;  %v267_v61 = vpop.permute.xlu1 %266 }
 0x302   :  { %v271_v62 = vpop.permute.xlu1 %270 }
 0x30f   :  { %241 = vrot.lane.b32.xlu1 %v6561_v57, %s6419_s10 }
 0x322   :  { %249 = vrot.lane.b32.xlu0 %v5726_v58, %s6418_s30 }
 0x326   :  { %v317_v60 = vpop.trf.xlu0 }
 0x327   :  { %5926 = vmatpush3.msra.mxu1 %v317_v60 }
 0x328   :  { %5928 = vmatmul.mubr.msk.f32.vlgmr.msra.gmra.mxu1 %vm429_vm6, %v235_v51  ;;  %5930 = vmatprep.subr.mxu1 %v6423_v52 }
 0x329   :  { %5932 = vmatprep.mubr.msk.f32.mxu1 %vm6424_vm5, %v6423_v52 }
 0x36d   :  { %v349_v63 = vpop.trf.xlu1 }
 0x36e   :  { %5931 = vmatpush3.msra.mxu1 %v349_v63 }
 0x36f   :  { %5933 = vmatmul.mubr.msk.f32.vlgmr.msra.gmra.mxu1 %vm429_vm6, %v267_v61  ;;  %5935 = vmatprep.subr.mxu1 %v6423_v52 }
 0x370   :  { %5937 = vmatprep.mubr.msk.f32.mxu1 %vm6424_vm5, %v6423_v52 }
 0x371   :  { %v381_v0 = vpop.trf.xlu0 }
 0x372   :  { %5936 = vmatpush3.msra.mxu1 %v381_v0 }
 0x373   :  { %5938 = vmatmul.mubr.msk.f32.vlgmr.msra.gmra.mxu1 %vm429_vm6, %v269_v59  ;;  %5940 = vmatprep.subr.mxu1 %v6423_v52 }
 0x374   :  { %5942 = vmatprep.mubr.msk.f32.mxu1 %vm6424_vm5, %v6423_v52 }
 0x375   :  { %v413_v1 = vpop.trf.xlu0 }
 0x376   :  { %5941 = vmatpush3.msra.mxu1 %v413_v1 }
 0x377   :  { %5943 = vmatmul.mubr.msk.f32.vlgmr.msra.gmra.mxu1 %vm429_vm6, %v271_v62  ;;  %5950 = vmatprep.subr.mxu1 %v6423_v52 }
 0x378   :  { %5952 = vmatprep.mubr.msk.f32.mxu1 %vm6424_vm5, %v6423_v52 }
 0x381   :  { %v6601_v20 = vpop.permute.xlu1 %241 }
 0x382   :  { %v246_v21 = vmul.f32 %v6601_v20, %v210_v3 }
 0x394   :  { %v6587_v4 = vpop.permute.xlu0 %249 }
 0x395   :  { %v254_v5 = vmul.f32 %v6587_v4, %v210_v3 }
 0x397   :  { %259 = vrot.lane.b32.xlu1 %v254_v5, %s6418_s30 }
 0x3e8   :  { %v498_v10 = vpop.f32.mrf.mxu1 }
 0x3e9   :  { %v499_v13 = vadd.f32 %v498_v10, %v6597_v9 }
 0x3ea   :  { %v5929_v15 = vpop.f32.mrf.mxu1 }
 0x3eb   :  { %v718_v17 = vsel %vm429_vm6, %v499_v13, -inf }
 0x3ec   :  { %719 = vmax.xlane.f32.xlu1 %v718_v17 }
 0x409   :  { %v260_v22 = vpop.permute.xlu1 %259 }
 0x40a   :  { %v264_v23 = vadd.f32 %v260_v22, %v246_v21 }
 0x40c   :  { %1483 = vrot.lane.b32.xlu1 %v264_v23, %s6420_s13 }
 0x410   :  { %1485 = vrot.lane.b32.xlu1 %v264_v23, %s6421_s14 }
 0x42f   :  { %v570_v12 = vpop.f32.mrf.mxu1 }
 0x430   :  { %v571_v18 = vadd.f32 %v570_v12, %v6597_v9 }
 0x431   :  { %v5934_v24 = vpop.f32.mrf.mxu1 }
 0x432   :  { %v721_v25 = vsel %vm429_vm6, %v571_v18, -inf }
 0x433   :  { %722 = vmax.xlane.f32.xlu0 %v721_v25  ;;  %v642_v26 = vpop.f32.mrf.mxu1 }
 0x434   :  { %v643_v27 = vadd.f32 %v642_v26, %v6597_v9 }
 0x435   :  { %v5939_v28 = vpop.f32.mrf.mxu1 }
 0x436   :  { %v724_v30 = vsel %vm429_vm6, %v643_v27, -inf }
 0x437   :  { %725 = vmax.xlane.f32.xlu0 %v724_v30  ;;  %v714_v31 = vpop.f32.mrf.mxu1 }
 0x438   :  { %v715_v39 = vadd.f32 %v714_v31, %v6597_v9 }
 0x439   :  { %v5944_v32 = vpop.f32.mrf.mxu1 }
 0x43a   :  { %v727_v41 = vsel %vm429_vm6, %v715_v39, -inf }
 0x44d   :  { %221 = vrot.lane.b32.xlu0 %v5726_v58, %s6414_s17 }
 0x451   :  { %1487 = vrot.lane.b32.xlu0 %v264_v23, %s6422_s1 }
 0x455   :  { %280 = vrot.lane.b32.xlu0 %v6585_v2, %s6420_s13 }
 0x459   :  { %283 = vrot.lane.b32.xlu0 %v6585_v2, %s6421_s14 }
 0x45d   :  { %1499 = vrot.lane.b32.xlu0 %v264_v23, %s6419_s10 }
 0x475   :  { %v720_v42 = vpop.xlane.xlu1 %719 }
 0x476   :  { %v730_v51 = vsub.f32 %v499_v13, %v720_v42 }
 0x478   :  { %v734_v53 = vmul.f32 1.442695, %v730_v51 }
 0x47e   :  { %v1484_v43 = vpop.permute.xlu1 %1483 }
 0x482   :  { %v1486_v45 = vpop.permute.xlu1 %1485 }
 0x4bc   :  { %v723_v33 = vpop.xlane.xlu0 %722 }
 0x4bd   :  { %v731_v49 = vsub.f32 %v571_v18, %v723_v33 }
 0x4bf   :  { %v736_v50 = vmul.f32 1.442695, %v731_v49 }
 0x4c0   :  { %v726_v34 = vpop.xlane.xlu0 %725 }
 0x4c1   :  { %6225 = vpow2.f32 %v736_v50  ;;  %v732_v54 = vsub.f32 %v643_v27, %v726_v34 }
 0x4c2   :  { %6227 = vpow2.f32 %v734_v53 }
 0x4c3   :  { %v738_v55 = vmul.f32 1.442695, %v732_v54 }
 0x4c4   :  { %v6617_v35 = vpop.permute.xlu0 %221 }
 0x4c5   :  { %v226_v36 = vmul.f32 %v6617_v35, %v210_v3  ;;  %6229 = vpow2.f32 %v738_v55 }
 0x4c7   :  { %231 = vrot.lane.b32.xlu1 %v226_v36, %s6418_s30 }
 0x4c8   :  { %v1488_v38 = vpop.permute.xlu0 %1487 }
 0x4c9   :  { %1505 = vrot.lane.b32.xlu0 %v1488_v38, %s6419_s10 }
 0x4cb   :  { %286 = vrot.lane.b32.xlu1 %v6585_v2, %s6422_s1 }
 0x4cc   :  { %v281_v7 = vpop.permute.xlu0 %280 }
 0x4ce   :  { %v6226_v56 = vpop.eup %6225 }
 0x4cf   :  { %v745_v57 = vsel %vm429_vm6, %v6226_v56, 0.0  ;;  %v6228_v58 = vpop.eup %6227 }
 0x4d0   :  { %v742_v59 = vsel %vm429_vm6, %v6228_v58, 0.0  ;;  %v284_v10 = vpop.permute.xlu0 %283 }
 0x4d2   :  { %v6230_v60 = vpop.eup %6229 }
 0x4d3   :  { %v748_v61 = vsel %vm429_vm6, %v6230_v60, 0.0 }
 0x4d4   :  { %v1500_v13 = vpop.permute.xlu0 %1499 }
 0x4ef   :  { %728 = vmax.xlane.f32.xlu1 %v727_v41 }
 0x500   :  { %1501 = vrot.lane.b32.xlu1 %v1484_v43, %s6419_s10 }
 0x504   :  { %1503 = vrot.lane.b32.xlu1 %v1486_v45, %s6419_s10 }
 0x539   :  { %v232_v47 = vpop.permute.xlu1 %231 }
 0x53a   :  { %v6629_v48 = vadd.f32 %v232_v47, %v216_v46  ;;  %v212_v47 = vpop.f32.mrf.mxu0 }
 0x53b   :  { %v1506_v15 = vpop.permute.xlu0 %1505 }
 0x53c   :  { %1478 = vrot.lane.b32.xlu0 %v6629_v48, %s6421_s14  ;;  %1476 = vrot.lane.b32.xlu1 %v6629_v48, %s6420_s13 }
 0x53d   :  { %v287_v62 = vpop.permute.xlu1 %286 }
 0x55b   :  { %746 = vadd.xlane.f32.xlu0 %v745_v57 }
 0x560   :  { %743 = vadd.xlane.f32.xlu1 %v742_v59 }
 0x564   :  { %749 = vadd.xlane.f32.xlu1 %v748_v61 }
 0x575   :  { %1480 = vrot.lane.b32.xlu1 %v6629_v48, %s6422_s1 }
 0x578   :  { %v729_v63 = vpop.xlane.xlu1 %728 }
 0x579   :  { %v733_v0 = vsub.f32 %v715_v39, %v729_v63 }
 0x57b   :  { %v740_v1 = vmul.f32 1.442695, %v733_v0 }
 0x57c   :  { %v1502_v6 = vpop.permute.xlu1 %1501 }
 0x57d   :  { %6231 = vpow2.f32 %v740_v1 }
 0x580   :  { %v1504_v8 = vpop.permute.xlu1 %1503 }
 0x58a   :  { %v6232_v3 = vpop.eup %6231 }
 0x58b   :  { %v751_v5 = vsel %vm429_vm6, %v6232_v3, 0.0 }
 0x58c   :  { %752 = vadd.xlane.f32.xlu0 %v751_v5 }
 0x59e   :  { %794 = vxpose.xlu1.b32.start.end [1/1] (short) (narrow) %v281_v7, 8 }
 0x5a2   :  { %1575 = vxpose.xlu1.b32.start.end [1/1] (short) (narrow) %v1504_v8, 8 }
 0x5ae   :  { %v1479_v17 = vpop.permute.xlu0 %1478  ;;  %v1477_v22 = vpop.permute.xlu1 %1476 }
 0x5b9   :  { %762 = vxpose.xlu0.b32.start.end [1/1] (short) (narrow) %v6585_v2, 8 }
 0x5bd   :  { %826 = vxpose.xlu0.b32.start.end [1/1] (short) (narrow) %v284_v10, 8 }
 0x5c1   :  { %858 = vxpose.xlu0.b32.start.end [1/1] (short) (narrow) %v287_v62, 8 }
 0x5c5   :  { %1511 = vxpose.xlu0.b32.start.end [1/1] (short) (narrow) %v1500_v13, 8 }
 0x5c9   :  { %1543 = vxpose.xlu0.b32.start.end [1/1] (short) (narrow) %v1502_v6, 8 }
 0x5cd   :  { %1607 = vxpose.xlu0.b32.start.end [1/1] (short) (narrow) %v1506_v15, 8 }
 0x5e4   :  { %v747_v21 = vpop.xlane.xlu0 %746 }
 0x5e5   :  { %6233 = vrcp.f32 %v747_v21 }
 0x5e9   :  { %v744_v23 = vpop.xlane.xlu1 %743 }
 0x5ea   :  { %6235 = vrcp.f32 %v744_v23 }
 0x5ed   :  { %v750_v25 = vpop.xlane.xlu1 %749 }
 0x5f1   :  { %v1481_v27 = vpop.permute.xlu1 %1480 }
 0x5f2   :  { %v6234_v12 = vpop.eup %6233 }
 0x5f3   :  { %v759_v18 = vmul.f32 %v6234_v12, %v6226_v56 }
 0x5f5   :  { %5951 = vmatpush3.xpose.msk.msra.mxu1 %vm429_vm6, %v759_v18 }
 0x5f6   :  { %5960 = vmatprep.subr.mxu1 %v6423_v52 }
 0x5f7   :  { %v6236_v2 = vpop.eup %6235 }
 0x5f8   :  { %v758_v24 = vmul.f32 %v6236_v2, %v6228_v58 }
 0x5fa   :  { %5946 = vmatpush3.xpose.msk.msra.mxu0 %vm429_vm6, %v758_v24 }
 0x5fb   :  { %5955 = vmatprep.subr.mxu0 %v6423_v52 }
 0x615   :  { %v753_v26 = vpop.xlane.xlu0 %752 }
 0x616   :  { %6237 = vrcp.f32 %v753_v26 }
 0x617   :  { %6239 = vrcp.f32 %v750_v25 }
 0x61a   :  { %v810_v28 = vpop.trf.xlu1 }
 0x61b   :  { %5953 = vmatmul.mubr.msk.f32.vlgmr.msra.gmra.mxu1 %vm429_vm6, %v810_v28 }
 0x61c   :  { %5962 = vmatprep.mubr.msk.f32.mxu1 %vm6424_vm5, %v6423_v52 }
 0x61e   :  { %v1591_v41 = vpop.trf.xlu1 }
 0x623   :  { %v6238_v30 = vpop.eup %6237 }
 0x624   :  { %v761_v31 = vmul.f32 %v6238_v30, %v6232_v3  ;;  %v6240_v32 = vpop.eup %6239 }
 0x625   :  { %v760_v34 = vmul.f32 %v6240_v32, %v6230_v60 }
 0x626   :  { %5961 = vmatpush3.xpose.msk.msra.mxu1 %vm429_vm6, %v761_v31 }
 0x627   :  { %5970 = vmatprep.subr.mxu1 %v6423_v52 }
 0x635   :  { %v778_v33 = vpop.trf.xlu0 }
 0x636   :  { %5948 = vmatmul.mubr.msk.f32.vlgmr.msra.gmra.mxu0 %vm429_vm6, %v778_v33 }
 0x637   :  { %5956 = vmatpush3.xpose.msk.msra.mxu0 %vm429_vm6, %v760_v34  ;;  %5957 = vmatprep.mubr.msk.f32.mxu0 %vm6424_vm5, %v6423_v52 }
 0x638   :  { %5965 = vmatprep.subr.mxu0 %v6423_v52 }
 0x639   :  { %v842_v36 = vpop.trf.xlu0 }
 0x63a   :  { %5958 = vmatmul.mubr.msk.f32.vlgmr.msra.gmra.mxu0 %vm429_vm6, %v842_v36 }
 0x63b   :  { %5967 = vmatprep.mubr.msk.f32.mxu0 %vm6424_vm5, %v6423_v52 }
 0x63d   :  { %v874_v38 = vpop.trf.xlu0 }
 0x63e   :  { %5963 = vmatmul.mubr.msk.f32.vlgmr.msra.gmra.mxu1 %vm429_vm6, %v874_v38 }
 0x63f   :  { %5972 = vmatprep.mubr.msk.f32.mxu1 %vm6424_vm5, %v6423_v52 }
 0x641   :  { %v1527_v39 = vpop.trf.xlu0 }
 0x642   :  { %5966 = vmatpush3.msra.mxu0 %v1527_v39 }
 0x643   :  { %5968 = vmatmul.mubr.msk.f32.vlgmr.msra.gmra.mxu0 %vm429_vm6, %v6629_v48  ;;  %5975 = vmatprep.subr.mxu0 %v6423_v52 }
 0x644   :  { %5976 = vmatpush3.msra.mxu0 %v1591_v41  ;;  %5977 = vmatprep.mubr.msk.f32.mxu0 %vm6424_vm5, %v6423_v52 }
 0x645   :  { %v1559_v42 = vpop.trf.xlu0  ;;  %5985 = vmatprep.subr.mxu0 %v6423_v52 }
 0x646   :  { %5971 = vmatpush3.msra.mxu1 %v1559_v42 }
 0x647   :  { %5973 = vmatmul.mubr.msk.f32.vlgmr.msra.gmra.mxu1 %vm429_vm6, %v1477_v22  ;;  %5978 = vmatmul.mubr.msk.f32.vlgmr.msra.gmra.mxu0 %vm429_vm6, %v1479_v17 }
 0x648   :  { %5980 = vmatprep.subr.mxu1 %v6423_v52  ;;  %5982 = vmatprep.mubr.msk.f32.mxu1 %vm6424_vm5, %v6423_v52 }
 0x649   :  { %v1623_v43 = vpop.trf.xlu0  ;;  %5987 = vmatprep.mubr.msk.f32.mxu0 %vm6424_vm5, %v6423_v52 }
 0x64a   :  { %5981 = vmatpush3.msra.mxu1 %v1623_v43 }
 0x64b   :  { %5983 = vmatmul.mubr.msk.f32.vlgmr.msra.gmra.mxu1 %vm429_vm6, %v1481_v27  ;;  %5990 = vmatprep.subr.mxu1 %v6423_v52 }
 0x64c   :  { %5992 = vmatprep.mubr.msk.f32.mxu1 %vm6424_vm5, %v6423_v52 }
 0x6db   :  { %v6679_v45 = vpop.f32.mrf.mxu1 }
 0x6dd   :  { %v5954_v46 = vpop.f32.mrf.mxu1 }
 0x6f6   :  { %v6681_v48 = vpop.f32.mrf.mxu0 }
 0x6f8   :  { %v5949_v49 = vpop.f32.mrf.mxu0 }
 0x6fa   :  { %v6683_v50 = vpop.f32.mrf.mxu0 }
 0x6fc   :  { %v5959_v51 = vpop.f32.mrf.mxu0 }
 0x6fe   :  { %v1190_v53 = vpop.f32.mrf.mxu1 }
 0x700   :  { %v5964_v54 = vpop.f32.mrf.mxu1 }
 0x703   :  { %v1707_v55 = vpop.f32.mrf.mxu0 }
 0x704   :  { %v1708_v56 = vadd.f32 %v1707_v55, %v6515_v19 }
 0x705   :  { %v5969_v57 = vpop.f32.mrf.mxu0 }
 0x706   :  { %v1927_v58 = vsel %vm429_vm6, %v1708_v56, -inf }
 0x707   :  { %v1779_v59 = vpop.f32.mrf.mxu1  ;;  %1928 = vmax.xlane.f32.xlu1 %v1927_v58  ;;  %v1851_v60 = vpop.f32.mrf.mxu0 }
 0x708   :  { %v1780_v61 = vadd.f32 %v1779_v59, %v6515_v19  ;;  %v1852_v62 = vadd.f32 %v1851_v60, %v6515_v19  ;;  %v6425_v59 = vmov 1983009808  }
 0x709   :  { %v5974_v63 = vpop.f32.mrf.mxu1  ;;  %v5979_v0 = vpop.f32.mrf.mxu0  ;;  %v1325_v60 = vunpack.c.l.s4 %v6425_v59 }
 0x70a   :  { %v1930_v1 = vsel %vm429_vm6, %v1780_v61, -inf  ;;  %v1933_v3 = vsel %vm429_vm6, %v1852_v62, -inf }
 0x70b   :  { %1931 = vmax.xlane.f32.xlu0 %v1930_v1  ;;  %v1923_v5 = vpop.f32.mrf.mxu1  ;;  %1934 = vmax.xlane.f32.xlu1 %v1933_v3  ;;  %v1326_v63 = vunpack.c.0.s8 %v1325_v60 }
 0x70c   :  { %v1924_v6 = vadd.f32 %v1923_v5, %v6515_v19  ;;  %v6426_v5 = vmov 1934713408  }
 0x70d   :  { %v5984_v7 = vpop.f32.mrf.mxu1  ;;  %v6724_v3 = vsub.s32 %v1326_v63, %v6496_v11 }
 0x70e   :  { %v1936_v8 = vsel %vm429_vm6, %v1924_v6, -inf }
 0x70f   :  { %1937 = vmax.xlane.f32.xlu1 %v1936_v8 }
 0x720   :  { %1490 = vrot.lane.b32.xlu1 %v212_v47, %s6420_s13 }
 0x721   :  { %1493 = vrot.lane.b32.xlu0 %v212_v47, %s6421_s14 }
 0x724   :  { %1496 = vrot.lane.b32.xlu1 %v212_v47, %s6422_s1 }
 0x790   :  { %v1929_v10 = vpop.xlane.xlu1 %1928 }
 0x791   :  { %v1939_v13 = vsub.f32 %v1708_v56, %v1929_v10 }
 0x793   :  { %v1943_v15 = vmul.f32 1.442695, %v1939_v13 }
 0x794   :  { %v1932_v17 = vpop.xlane.xlu0 %1931  ;;  %v1935_v21 = vpop.xlane.xlu1 %1934 }
 0x795   :  { %6241 = vpow2.f32 %v1943_v15  ;;  %v1940_v22 = vsub.f32 %v1780_v61, %v1932_v17  ;;  %v1941_v23 = vsub.f32 %v1852_v62, %v1935_v21 }
 0x797   :  { %v1945_v12 = vmul.f32 1.442695, %v1940_v22  ;;  %v1947_v18 = vmul.f32 1.442695, %v1941_v23 }
 0x798   :  { %v1938_v2 = vpop.xlane.xlu1 %1937  ;;  %v1494_v38 = vpop.permute.xlu0 %1493 }
 0x799   :  { %6243 = vpow2.f32 %v1945_v12  ;;  %v1942_v24 = vsub.f32 %v1924_v6, %v1938_v2  ;;  %v1357_v6 = vunpack.c.l.s4 %v6426_v5 }
 0x79a   :  { %6245 = vpow2.f32 %v1947_v18 }
 0x79b   :  { %v1949_v25 = vmul.f32 1.442695, %v1942_v24  ;;  %v1358_v15 = vunpack.c.0.s8 %v1357_v6 }
 0x79c   :  { %v1491_v36 = vpop.permute.xlu1 %1490 }
 0x79d   :  { %6247 = vpow2.f32 %v1949_v25  ;;  %v6731_v12 = vsub.s32 %v1358_v15, %v6496_v11 }
 0x7a0   :  { %v1497_v39 = vpop.permute.xlu1 %1496 }
 0x7a2   :  { %v6242_v26 = vpop.eup %6241 }
 0x7a3   :  { %v1951_v27 = vsel %vm429_vm6, %v6242_v26, 0.0 }
 0x7a4   :  { %1952 = vadd.xlane.f32.xlu0 %v1951_v27 }
 0x7a6   :  { %v6244_v28 = vpop.eup %6243 }
 0x7a7   :  { %v6246_v30 = vpop.eup %6245  ;;  %v1954_v31 = vsel %vm429_vm6, %v6244_v28, 0.0 }
 0x7a8   :  { %1955 = vadd.xlane.f32.xlu0 %v1954_v31  ;;  %v1957_v32 = vsel %vm429_vm6, %v6246_v30, 0.0 }
 0x7a9   :  { %1958 = vadd.xlane.f32.xlu1 %v1957_v32 }
 0x7aa   :  { %v6248_v33 = vpop.eup %6247 }
 0x7ab   :  { %v1960_v34 = vsel %vm429_vm6, %v6248_v33, 0.0 }
 0x7ac   :  { %1961 = vadd.xlane.f32.xlu0 %v1960_v34 }
 0x7d9   :  { %2003 = vxpose.xlu0.b32.start.end [1/1] (short) (narrow) %v1491_v36, 8 }
 0x7dc   :  { %1971 = vxpose.xlu1.b32.start.end [1/1] (short) (narrow) %v212_v47, 8 }
 0x7dd   :  { %2035 = vxpose.xlu0.b32.start.end [1/1] (short) (narrow) %v1494_v38, 8 }
 0x7e0   :  { %2067 = vxpose.xlu1.b32.start.end [1/1] (short) (narrow) %v1497_v39, 8 }
 0x7e1   :  { %1194 = vxpose.xlu0.b32.start.end [1/1] (short) (narrow) %v6681_v48, 8 }
 0x7e4   :  { %1226 = vxpose.xlu1.b32.start.end [1/1] (short) (narrow) %v6679_v45, 8 }
 0x7e5   :  { %1258 = vxpose.xlu0.b32.start.end [1/1] (short) (narrow) %v6683_v50, 8 }
 0x7e8   :  { %1290 = vxpose.xlu1.b32.start.end [1/1] (short) (narrow) %v1190_v53, 8 }
 0x82d   :  { %v1953_v41 = vpop.xlane.xlu0 %1952 }
 0x82e   :  { %6249 = vrcp.f32 %v1953_v41 }
 0x831   :  { %v1956_v42 = vpop.xlane.xlu0 %1955 }
 0x832   :  { %6251 = vrcp.f32 %v1956_v42  ;;  %v1959_v45 = vpop.xlane.xlu1 %1958 }
 0x835   :  { %v1962_v51 = vpop.xlane.xlu0 %1961 }
 0x836   :  { %6253 = vrcp.f32 %v1962_v51 }
 0x837   :  { %6255 = vrcp.f32 %v1959_v45 }
 0x83b   :  { %v6250_v43 = vpop.eup %6249 }
 0x83c   :  { %v1967_v46 = vmul.f32 %v6250_v43, %v6242_v26 }
 0x83e   :  { %5986 = vmatpush3.xpose.msk.msra.mxu0 %vm429_vm6, %v1967_v46 }
 0x83f   :  { %v6252_v49 = vpop.eup %6251  ;;  %5995 = vmatprep.subr.mxu0 %v6423_v52 }
 0x840   :  { %v1968_v47 = vmul.f32 %v6252_v49, %v6244_v28 }
 0x842   :  { %5991 = vmatpush3.xpose.msk.msra.mxu1 %vm429_vm6, %v1968_v47 }
 0x843   :  { %6000 = vmatprep.subr.mxu1 %v6423_v52  ;;  %v6254_v48 = vpop.eup %6253 }
 0x844   :  { %v6256_v50 = vpop.eup %6255  ;;  %v1970_v54 = vmul.f32 %v6254_v48, %v6248_v33 }
 0x845   :  { %v1969_v56 = vmul.f32 %v6256_v50, %v6246_v30 }
 0x855   :  { %v2019_v53 = vpop.trf.xlu0 }
 0x856   :  { %5993 = vmatmul.mubr.msk.f32.vlgmr.msra.gmra.mxu1 %vm429_vm6, %v2019_v53 }
 0x857   :  { %6001 = vmatpush3.xpose.msk.msra.mxu1 %vm429_vm6, %v1970_v54  ;;  %6002 = vmatprep.mubr.msk.f32.mxu1 %vm6424_vm5, %v6423_v52 }
 0x858   :  { %v1987_v55 = vpop.trf.xlu1  ;;  %6005 = vmatprep.subr.bf16.mxu1 %v6423_v52 }
 0x859   :  { %5988 = vmatmul.mubr.msk.f32.vlgmr.msra.gmra.mxu0 %vm429_vm6, %v1987_v55  ;;  %v2051_v57 = vpop.trf.xlu0 }
 0x85a   :  { %5996 = vmatpush3.xpose.msk.msra.mxu0 %vm429_vm6, %v1969_v56  ;;  %5997 = vmatprep.mubr.msk.f32.mxu0 %vm6424_vm5, %v6423_v52 }
 0x85b   :  { %6021 = vmatprep.subr.bf16.mxu0 %v6423_v52 }
 0x85c   :  { %v2083_v58 = vpop.trf.xlu1 }
 0x85d   :  { %5998 = vmatmul.mubr.msk.f32.vlgmr.msra.gmra.mxu0 %vm429_vm6, %v2051_v57  ;;  %6003 = vmatmul.mubr.msk.f32.vlgmr.msra.gmra.mxu1 %vm429_vm6, %v2083_v58  ;;  %v1210_v61 = vpop.trf.xlu0 }
 0x85e   :  { %6009 = vmatprep.mubr.msk.bf16.mxu1 %vm6424_vm5, %v6423_v52  ;;  %6029 = vmatprep.mubr.msk.bf16.mxu0 %vm6424_vm5, %v6423_v52 }
 0x860   :  { %v1242_v62 = vpop.trf.xlu1 }
 0x861   :  { %v1274_v0 = vpop.trf.xlu0 }
 0x862   :  { %v1322_v7 = vcombine.low %v1210_v61, %v1274_v0  ;;  %v1323_v8 = vcombine.high %v1210_v61, %v1274_v0 }
 0x864   :  { %v1306_v1 = vpop.trf.xlu1  ;;  %v1330_v17 = vrot.slane %v1322_v7, %v6724_v3  ;;  %v1337_v21 = vrot.slane %v1323_v8, %v6724_v3 }
 0x865   :  { %v1338_v10 = vcombine.low %v1242_v62, %v1306_v1  ;;  %v1339_v13 = vcombine.high %v1242_v62, %v1306_v1 }
 0x867   :  { %v1346_v22 = vrot.slane %v1338_v10, %v6724_v3  ;;  %v1353_v23 = vrot.slane %v1339_v13, %v6724_v3 }
 0x869   :  { %v1354_v18 = vcombine.low %v1330_v17, %v1346_v22  ;;  %v1355_v2 = vcombine.high %v1330_v17, %v1346_v22  ;;  %v1370_v24 = vcombine.low %v1337_v21, %v1353_v23  ;;  %v1371_v25 = vcombine.high %v1337_v21, %v1353_v23 }
 0x86b   :  { %v1362_v26 = vrot.slane %v1354_v18, %v6731_v12  ;;  %v1369_v27 = vrot.slane %v1355_v2, %v6731_v12  ;;  %v1378_v28 = vrot.slane %v1370_v24, %v6731_v12  ;;  %v1385_v30 = vrot.slane %v1371_v25, %v6731_v12 }
 0x86d   :  { %v1390_v32 = vcombine.low %v1362_v26, %v1369_v27  ;;  %v5744_v33 = vcombine.high %v1362_v26, %v1369_v27  ;;  %v1406_v34 = vcombine.low %v1378_v28, %v1385_v30  ;;  %v5745_v36 = vcombine.high %v1378_v28, %v1385_v30  ;;  %v6199_v28 = vld [vmem:[%s7161_s5 + $0x8] sm:$0xff]  }
 0x86e   :  { %6006 = vmatpush3.bf16.msra.mxu1 %v6199_v28 }
 0x86f   :  { %v1397_v41 = vrot.slane %v1390_v32, %v6724_v3  ;;  %v1405_v42 = vrot.slane %v5744_v33, %v6724_v3  ;;  %v1413_v43 = vrot.slane %v1406_v34, %v6724_v3  ;;  %v1421_v46 = vrot.slane %v5745_v36, %v6724_v3  ;;  %6007 = vmatprep.subr.bf16.mxu1 %v6423_v52 }
 0x871   :  { %v1422_v47 = vcombine.low %v1397_v41, %v1405_v42  ;;  %v1438_v51 = vcombine.low %v1413_v43, %v1421_v46  ;;  %v1423_v18 = vcombine.high %v1397_v41, %v1405_v42  ;;  %v1439_v2 = vcombine.high %v1413_v43, %v1421_v46  ;;  %v6200_v43 = vld [vmem:[%s7161_s5] sm:$0xff]  }
 0x872   :  { %6008 = vmatpush3.bf16.msra.mxu1 %v6200_v43 }
 0x873   :  { %v6742_v50 = vrot.slane %v1422_v47, %v6731_v12  ;;  %v6745_v55 = vrot.slane %v1438_v51, %v6731_v12  ;;  %v1437_v34 = vrot.slane %v1423_v18, %v6731_v12  ;;  %v1453_v36 = vrot.slane %v1439_v2, %v6731_v12  ;;  %6013 = vmatprep.subr.bf16.mxu1 %v6423_v52 }
 0x875   :  { %v1454_v56 = vcombine.low %v6742_v50, %v6745_v55 }
 0x916   :  { %v2247_v31 = vpop.f32.mrf.mxu1 }
 0x917   :  { %2435 = vxpose.xlu1.b32.start.end [1/1] (short) (narrow) %v2247_v31, 8 }
 0x918   :  { %v5994_v38 = vpop.f32.mrf.mxu1 }
 0x919   :  { %v2171_v39 = vpop.f32.mrf.mxu0 }
 0x91a   :  { %2403 = vxpose.xlu0.b32.start.end [1/1] (short) (narrow) %v2171_v39, 8 }
 0x91b   :  { %v5989_v49 = vpop.f32.mrf.mxu0 }
 0x91d   :  { %v2323_v45 = vpop.f32.mrf.mxu0  ;;  %v2399_v48 = vpop.f32.mrf.mxu1 }
 0x91e   :  { %2499 = vxpose.xlu1.b32.start.end [1/1] (short) (narrow) %v2399_v48, 8  ;;  %2467 = vxpose.xlu0.b32.start.end [1/1] (short) (narrow) %v2323_v45, 8  ;;  %v1456_v45 = vcombine.low %v1437_v34, %v1453_v36 }
 0x91f   :  { %v5999_v53 = vpop.f32.mrf.mxu0  ;;  %v6004_v54 = vpop.f32.mrf.mxu1 }
 0x920   :  { %v1455_v53 = vcombine.high %v6742_v50, %v6745_v55  ;;  %v6317_v55 = vld [vmem:[#allocation2] sm:$0xff] }
 0x993   :  { %v2451_v57 = vpop.trf.xlu1 }
 0x996   :  { %v2419_v58 = vpop.trf.xlu0 }
 0x99a   :  { %v2515_v59 = vpop.trf.xlu1  ;;  %v2483_v60 = vpop.trf.xlu0 }
 0x99b   :  { %v2547_v61 = vcombine.low %v2451_v57, %v2515_v59  ;;  %v2548_v62 = vcombine.high %v2451_v57, %v2515_v59  ;;  %v2531_v63 = vcombine.low %v2419_v58, %v2483_v60  ;;  %v2532_v0 = vcombine.high %v2419_v58, %v2483_v60 }
 0x99d   :  { %v2555_v1 = vrot.slane %v2547_v61, %v6724_v3  ;;  %v2562_v5 = vrot.slane %v2548_v62, %v6724_v3  ;;  %v2539_v6 = vrot.slane %v2531_v63, %v6724_v3  ;;  %v2546_v7 = vrot.slane %v2532_v0, %v6724_v3 }
 0x99e   :  { %v1457_v61 = vcombine.high %v1437_v34, %v1453_v36  ;;  %v6201_v34 = vld [vmem:[%s7160_s4 + $0x8] sm:$0xff]   ;;  %v6202_v36 = vld [vmem:[%s7160_s4] sm:$0xff]  }
 0x99f   :  { %v2563_v8 = vcombine.low %v2539_v6, %v2555_v1  ;;  %v2564_v10 = vcombine.high %v2539_v6, %v2555_v1  ;;  %v2579_v13 = vcombine.low %v2546_v7, %v2562_v5  ;;  %v2580_v15 = vcombine.high %v2546_v7, %v2562_v5 }
 0x9a1   :  { %v2571_v17 = vrot.slane %v2563_v8, %v6731_v12  ;;  %v2578_v21 = vrot.slane %v2564_v10, %v6731_v12  ;;  %v2587_v22 = vrot.slane %v2579_v13, %v6731_v12  ;;  %v2594_v23 = vrot.slane %v2580_v15, %v6731_v12 }
 0x9a3   :  { %v2599_v24 = vcombine.low %v2571_v17, %v2578_v21  ;;  %v5758_v25 = vcombine.high %v2571_v17, %v2578_v21  ;;  %v2615_v26 = vcombine.low %v2587_v22, %v2594_v23  ;;  %v5759_v27 = vcombine.high %v2587_v22, %v2594_v23 }
 0x9a5   :  { %v2606_v30 = vrot.slane %v2599_v24, %v6724_v3  ;;  %v2614_v31 = vrot.slane %v5758_v25, %v6724_v3  ;;  %v2622_v32 = vrot.slane %v2615_v26, %v6724_v3  ;;  %v2630_v33 = vrot.slane %v5759_v27, %v6724_v3  ;;  %v6318_v27 = vld [vmem:[#allocation2 + $0x8] sm:$0xff] }
 0x9a7   :  { %v2632_v38 = vcombine.high %v2606_v30, %v2614_v31  ;;  %v2648_v39 = vcombine.high %v2622_v32, %v2630_v33  ;;  %v2631_v41 = vcombine.low %v2606_v30, %v2614_v31  ;;  %v2647_v42 = vcombine.low %v2622_v32, %v2630_v33 }
 0x9a9   :  { %v2646_v46 = vrot.slane %v2632_v38, %v6731_v12  ;;  %v2662_v49 = vrot.slane %v2648_v39, %v6731_v12  ;;  %v2639_v47 = vrot.slane %v2631_v41, %v6731_v12  ;;  %v2655_v51 = vrot.slane %v2647_v42, %v6731_v12 }
 0x9ab   :  { %v2665_v48 = vcombine.low %v2646_v46, %v2662_v49  ;;  %v2664_v54 = vcombine.high %v2639_v47, %v2655_v51  ;;  %v2663_v57 = vcombine.low %v2639_v47, %v2655_v51  ;;  %v2666_v60 = vcombine.high %v2646_v46, %v2662_v49 }
 0x9ac   :  { %v2759_v49 = vsub.s32 1, %v6496_v11  ;;  %v6219_v11 = vld [vmem:[%s7161_s5 + $0x48] sm:$0xff]  }
 0x9ad   :  { %v6168_v58 = vpack.i.bf16 %v2665_v48, %v1456_v45  ;;  %v6163_v59 = vpack.i.bf16 %v2664_v54, %v1455_v53  ;;  %v6173_v62 = vpack.i.bf16 %v2666_v60, %v1457_v61  ;;  %v6205_v60 = vld [vmem:[%s7161_s5 + $0x18] sm:$0xff]  }
 0x9ae   :  { %v2760_v51 = vrot.slane %v6526_v29, %v2759_v49  ;;  %v6204_v29 = vld [vmem:[%s7161_s5 + $0x20] sm:$0xff]  }
 0x9af   :  { %6169 = vrot.lane.b32.xlu1 %v6168_v58, %s6408_s27  ;;  %6164 = vrot.lane.b32.xlu0 %v6163_v59, %s6412_s12  ;;  %v6203_v59 = vld [vmem:[%s7161_s5 + $0x28] sm:$0xff]  }
 0x9b0   :  { %6022 = vmatpush3.bf16.msra.mxu0 %v6203_v59 }
 0x9b1   :  { %6023 = vmatprep.subr.bf16.mxu0 %v6423_v52 }
 0x9b3   :  { %6174 = vrot.lane.b32.xlu1 %v6173_v62, %s6427_s2 }
 0x9b4   :  { %6024 = vmatpush3.bf16.msra.mxu0 %v6204_v29 }
 0x9b5   :  { %6025 = vmatprep.subr.bf16.mxu0 %v6423_v52 }
 0x9b8   :  { %6026 = vmatpush3.bf16.msra.mxu0 %v6205_v60 }
 0x9b9   :  { %6027 = vmatprep.subr.bf16.mxu0 %v6423_v52 }
 0xa21   :  { %v6170_v63 = vpop.permute.xlu1 %6169  ;;  %v6165_v0 = vpop.permute.xlu0 %6164 }
 0xa22   :  { %v6167_v1 = vunpack.i.h.bf16 %v6165_v0  ;;  %v6166_v5 = vunpack.i.l.bf16 %v6165_v0  ;;  %v6172_v6 = vunpack.i.h.bf16 %v6170_v63  ;;  %v6171_v7 = vunpack.i.l.bf16 %v6170_v63 }
 0xa24   :  { %v1470_v8 = vsel %vm429_vm6, %v1454_v56, %v6166_v5  ;;  %v2679_v10 = vsel %vm429_vm6, %v2663_v57, %v6167_v1 }
 0xa25   :  { %v6175_v13 = vpop.permute.xlu1 %6174  ;;  %v1472_v21 = vsel %vm1471_vm10, %v1470_v8, %v6171_v7  ;;  %v2680_v22 = vsel %vm1471_vm10, %v2679_v10, %v6172_v6 }
 0xa26   :  { %v6177_v15 = vunpack.i.h.bf16 %v6175_v13  ;;  %v6176_v17 = vunpack.i.l.bf16 %v6175_v13 }
 0xa28   :  { %v1474_v23 = vsel %vm1473_vm11, %v1472_v21, %v6176_v17  ;;  %v2681_v18 = vsel %vm1473_vm11, %v2680_v22, %v6177_v15 }
 0xa29   :  { %v2682_v2 = vpack.c.bf16 %v2681_v18, %v1474_v23 }
 0xa2b   :  { %6010 = vmatmul.mubr.msk.bf16.vlgmr.msra.gmra.mxu1 %vm126_vm0, %v2682_v2 }
 0xa2c   :  { %6017 = vmatprep.mubr.msk.bf16.mxu1 %vm6424_vm5, %v6423_v52  ;;  %6014 = vmatpush3.bf16.msra.mxu1 %v6201_v34 }
 0xa2d   :  { %6015 = vmatprep.subr.bf16.mxu1 %v6423_v52 }
 0xa30   :  { %6016 = vmatpush3.bf16.msra.mxu1 %v6202_v36  ;;  %v6207_v36 = vld [vmem:[%s7159_s3 + $0x30] ss:$8 sps:$4 sm:$0xff]  }
 0xaeb   :  { %v2732_v50 = vpop.f32.mrf.mxu1 }
 0xaec   :  { %v6792_v56 = vadd.f32 %v6317_v55, %v2732_v50 }
 0xaed   :  { %v6011_v24 = vpop.f32.mrf.mxu1 }
 0xaee   :  { %v2741_v25 = vmul.f32 %v6792_v56, %v6792_v56 }
 0xaef   :  { %v2735_v26 = vpop.f32.mrf.mxu1 }
 0xaf0   :  { %v6796_v28 = vadd.f32 %v6318_v27, %v2735_v26  ;;  %v2743_v30 = vsel %vm126_vm0, %v2741_v25, 0.0 }
 0xaf1   :  { %2744 = vadd.xlane.f32.xlu1 %v2743_v30  ;;  %v6012_v31 = vpop.f32.mrf.mxu1 }
 0xaf2   :  { %v2742_v32 = vmul.f32 %v6796_v28, %v6796_v28 }
 0xaf4   :  { %v2746_v33 = vsel %vm126_vm0, %v2742_v32, 0.0 }
 0xaf5   :  { %2747 = vadd.xlane.f32.xlu0 %v2746_v33 }
 0xb7a   :  { %v2745_v38 = vpop.xlane.xlu1 %2744 }
 0xb7b   :  { %v2749_v39 = vmul.f32 0.03125, %v2745_v38  ;;  %v6212_v38 = vld [vmem:[%s7159_s3 + $0x24] ss:$8 sps:$4 sm:$0xff]  }
 0xb7d   :  { %v2751_v41 = vadd.f32 1e-05, %v2749_v39 }
 0xb7e   :  { %v2748_v42 = vpop.xlane.xlu0 %2747 }
 0xb7f   :  { %6257 = vrsqrt.f32 %v2751_v41  ;;  %v2750_v43 = vmul.f32 0.03125, %v2748_v42 }
 0xb81   :  { %v2752_v46 = vadd.f32 1e-05, %v2750_v43 }
 0xb83   :  { %6259 = vrsqrt.f32 %v2752_v46 }
 0xb8c   :  { %v6258_v47 = vpop.eup %6257 }
 0xb8d   :  { %v2755_v45 = vmul.f32 %v6258_v47, %v6792_v56 }
 0xb8f   :  { %v2761_v54 = vmul.f32 %v2760_v51, %v2755_v45  ;;  %v6863_v45 = vld [vmem:[#allocation7 + $0x2] sm:$0x3] }
 0xb90   :  { %v6260_v48 = vpop.eup %6259 }
 0xb91   :  { %v2756_v53 = vmul.f32 %v6260_v48, %v6796_v28 }
 0xb93   :  { %v2762_v57 = vmul.f32 %v2760_v51, %v2756_v53  ;;  %v2960_v53 = vrot.slane %v6863_v45, %v6507_v16 }
 0xb95   :  { %v2763_v58 = vpack.c.bf16 %v2762_v57, %v2761_v54 }
 0xb97   :  { %6018 = vmatmul.mubr.msk.bf16.vlgmr.msra.gmra.mxu1 %vm126_vm0, %v2763_v58 }
 0xb98   :  { %3019 = vmatprep.mubr.bf16.mxu1 %v6416_v14  ;;  %v6206_v14 = vld [vmem:[%s7161_s5 + $0x10] sm:$0xff]  }
 0xb99   :  { %6028 = vmatpush3.bf16.msra.mxu0 %v6206_v14 }
 0xb9a   :  { %6043 = vmatprep.subr.mxu0 %v6423_v52 }
 0xc57   :  { %v2813_v61 = vpop.f32.mrf.mxu1 }
 0xc58   :  { %2836 = vrot.lane.b32.xlu1 %v2813_v61, %s6419_s10  ;;  %v5766_v1 = vmul.f32 -1.442695, %v2813_v61 }
 0xc59   :  { %v6019_v62 = vpop.f32.mrf.mxu1 }
 0xc5a   :  { %6261 = vpow2.f32 %v5766_v1 }
 0xc5b   :  { %v2816_v63 = vpop.f32.mrf.mxu1 }
 0xc5c   :  { %2838 = vrot.lane.b32.xlu0 %v2816_v63, %s6419_s10  ;;  %v5767_v5 = vmul.f32 -1.442695, %v2816_v63 }
 0xc5d   :  { %v6020_v0 = vpop.f32.mrf.mxu1 }
 0xc5e   :  { %6263 = vpow2.f32 %v5767_v5 }
 0xc67   :  { %v6262_v6 = vpop.eup %6261 }
 0xc68   :  { %v2826_v8 = vadd.f32 1.0, %v6262_v6 }
 0xc6a   :  { %6265 = vrcp.f32 %v2826_v8 }
 0xc6b   :  { %v6264_v7 = vpop.eup %6263 }
 0xc6c   :  { %v2827_v10 = vadd.f32 1.0, %v6264_v7 }
 0xc6e   :  { %6267 = vrcp.f32 %v2827_v10 }
 0xc77   :  { %v6266_v13 = vpop.eup %6265 }
 0xc78   :  { %v2832_v21 = vmul.f32 %v6266_v13, %v2813_v61 }
 0xc7b   :  { %v6268_v15 = vpop.eup %6267 }
 0xc7c   :  { %v2833_v22 = vmul.f32 %v6268_v15, %v2816_v63 }
 0xcca   :  { %v2837_v17 = vpop.permute.xlu1 %2836 }
 0xccb   :  { %v2842_v18 = vmul.f32 %v2837_v17, %v2832_v21 }
 0xcce   :  { %v2839_v23 = vpop.permute.xlu0 %2838 }
 0xccf   :  { %v2843_v2 = vmul.f32 %v2839_v23, %v2833_v22 }
 0xcd1   :  { %v2844_v50 = vpack.c.bf16 %v2843_v2, %v2842_v18 }
 0xcd3   :  { %6030 = vmatmul.mubr.msk.bf16.vlgmr.msra.gmra.mxu0 %vm2869_vm12, %v2844_v50 }
 0xcd4   :  { %6045 = vmatprep.mubr.msk.f32.mxu0 %vm6424_vm5, %v6423_v52 }
 0xd93   :  { %v2907_v55 = vpop.f32.mrf.mxu0 }
 0xd94   :  { %v6839_v24 = vadd.f32 %v2907_v55, %v6792_v56  ;;  %v6209_v56 = vld [vmem:[%s7159_s3 + $0x34] ss:$8 sps:$4 sm:$0xff]  }
 0xd95   :  { %v6031_v25 = vpop.f32.mrf.mxu0  ;;  %2999 = vmatprep.subr.bf16.mxu1 %v6209_v56 }
 0xd96   :  { %v2941_v26 = vmul.f32 %v6839_v24, %v6839_v24  ;;  %3000 = vmatpush1.bf16.msra.mxu1 %v6207_v36 }
 0xd97   :  { %v2910_v27 = vpop.f32.mrf.mxu0  ;;  %3001 = vmatprep.subr.bf16.mxu1 %v6212_v38 }
 0xd98   :  { %v6844_v30 = vadd.f32 %v2910_v27, %v6796_v28  ;;  %v2943_v31 = vsel %vm126_vm0, %v2941_v26, 0.0  ;;  %v6210_v28 = vld [vmem:[%s7159_s3 + $0x20] ss:$8 sps:$4 sm:$0xff]  }
 0xd99   :  { %2944 = vadd.xlane.f32.xlu1 %v2943_v31  ;;  %v6032_v32 = vpop.f32.mrf.mxu0 }
 0xd9a   :  { %v2942_v33 = vmul.f32 %v6844_v30, %v6844_v30  ;;  %3002 = vmatpush1.bf16.msra.mxu1 %v6210_v28 }
 0xd9b   :  { %6033 = vmatprep.subr.mxu1 %v6423_v52 }
 0xd9c   :  { %v2946_v34 = vsel %vm126_vm0, %v2942_v33, 0.0 }
 0xd9d   :  { %2947 = vadd.xlane.f32.xlu0 %v2946_v34 }
 0xe22   :  { %v2945_v39 = vpop.xlane.xlu1 %2944 }
 0xe23   :  { %v2949_v41 = vmul.f32 0.03125, %v2945_v39 }
 0xe25   :  { %v2951_v42 = vadd.f32 1e-05, %v2949_v41 }
 0xe26   :  { %v2948_v43 = vpop.xlane.xlu0 %2947 }
 0xe27   :  { %6269 = vrsqrt.f32 %v2951_v42  ;;  %v2950_v46 = vmul.f32 0.03125, %v2948_v43 }
 0xe29   :  { %v2952_v47 = vadd.f32 1e-05, %v2950_v46 }
 0xe2b   :  { %6271 = vrsqrt.f32 %v2952_v47 }
 0xe34   :  { %v6270_v51 = vpop.eup %6269 }
 0xe35   :  { %v2955_v48 = vmul.f32 %v6270_v51, %v6839_v24 }
 0xe37   :  { %v2961_v58 = vmul.f32 %v2960_v53, %v2955_v48 }
 0xe38   :  { %v6272_v54 = vpop.eup %6271 }
 0xe39   :  { %v2956_v57 = vmul.f32 %v6272_v54, %v6844_v30 }
 0xe3b   :  { %v2962_v59 = vmul.f32 %v2960_v53, %v2956_v57 }
 0xe3d   :  { %v2963_v29 = vpack.c.bf16 %v2962_v59, %v2961_v58 }
 0xe3f   :  { %5797 = vmatmul.mubr.msk.bf16.vlgmr.msra.gmra.mxu1 %vm126_vm0, %v2963_v29 }
 0xe40   :  { %6035 = vmatprep.mubr.msk.f32.mxu1 %vm6424_vm5, %v6423_v52 }
 0xeff   :  { %v3021_v60 = vpop.f32.mrf.mxu1 }
 0xf00   :  { %v3046_v14 = vmul.f32 %v3021_v60, %v6531_v37  ;;  %v3044_v61 = vmul.f32 %v3021_v60, %v6535_v40  ;;  %v3032_v63 = vmul.f32 %v3021_v60, %v6540_v44  ;;  %v6319_v40 = vld [vmem:[%s7162_s6] sm:$0xff] }
 0xf01   :  { %v3030_v1 = vmul.f32 %v6319_v40, %v3021_v60  ;;  %v6890_v15 = vpop.f32.mrf.mxu1 }
 0xf02   :  { %3050 = vrot.lane.b32.xlu1 %v3046_v14, %s6418_s30 }
 0xf03   :  { %v6892_v17 = vpop.f32.mrf.mxu1 }
 0xf04   :  { %v3047_v21 = vmul.f32 %v6892_v17, %v6587_v4  ;;  %v3045_v34 = vmul.f32 %v6892_v17, %v6601_v20  ;;  %v3033_v36 = vmul.f32 %v6892_v17, %v6617_v35 }
 0xf05   :  { %v6913_v25 = vpop.f32.mrf.mxu1 }
 0xf74   :  { %v3051_v62 = vpop.permute.xlu1 %3050 }
 0xf75   :  { %v3056_v16 = vadd.f32 %v3051_v62, %v3044_v61 }
 0xf77   :  { %3068 = vrot.lane.b32.xlu1 %v3056_v16, %s6421_s14  ;;  %3066 = vrot.lane.b32.xlu0 %v3056_v16, %s6420_s13 }
 0xf7b   :  { %3070 = vrot.lane.b32.xlu1 %v3056_v16, %s6422_s1  ;;  %3036 = vrot.lane.b32.xlu0 %v3032_v63, %s6418_s30 }
 0xf7f   :  { %3082 = vrot.lane.b32.xlu1 %v3056_v16, %s6419_s10 }
 0xfe9   :  { %v3069_v0 = vpop.permute.xlu1 %3068  ;;  %v3067_v37 = vpop.permute.xlu0 %3066 }
 0xfea   :  { %3086 = vrot.lane.b32.xlu1 %v3069_v0, %s6419_s10  ;;  %3084 = vrot.lane.b32.xlu0 %v3067_v37, %s6419_s10  ;;  %v6320_v0 = vld [vmem:[%s7162_s6 + $0x8] sm:$0xff] }
 0xfeb   :  { %v3031_v37 = vmul.f32 %v6320_v0, %v6892_v17 }
 0xfed   :  { %v3071_v5 = vpop.permute.xlu1 %3070  ;;  %v3037_v6 = vpop.permute.xlu0 %3036 }
 0xfee   :  { %v3042_v44 = vadd.f32 %v3037_v6, %v3030_v1  ;;  %3088 = vrot.lane.b32.xlu0 %v3071_v5, %s6419_s10 }
 0xff0   :  { %3059 = vrot.lane.b32.xlu1 %v3042_v44, %s6420_s13 }
 0xff1   :  { %v3083_v7 = vpop.permute.xlu1 %3082 }
 0xff2   :  { %3061 = vrot.lane.b32.xlu0 %v3042_v44, %s6421_s14 }
 0xff4   :  { %3063 = vrot.lane.b32.xlu1 %v3042_v44, %s6422_s1 }
0x1010   :  { %3094 = vxpose.xlu0.b32.start.end [1/1] (short) (narrow) %v3083_v7, 8 }
0x105c   :  { %v3087_v8 = vpop.permute.xlu1 %3086  ;;  %v3085_v10 = vpop.permute.xlu0 %3084 }
0x105d   :  { %3158 = vxpose.xlu0.b32.start.end [1/1] (short) (narrow) %v3087_v8, 8  ;;  %3126 = vxpose.xlu1.b32.start.end [1/1] (short) (narrow) %v3085_v10, 8 }
0x1060   :  { %v3089_v13 = vpop.permute.xlu0 %3088 }
0x1061   :  { %3190 = vxpose.xlu0.b32.start.end [1/1] (short) (narrow) %v3089_v13, 8 }
0x1062   :  { %v3060_v18 = vpop.permute.xlu1 %3059 }
0x1064   :  { %v3062_v22 = vpop.permute.xlu0 %3061 }
0x1066   :  { %v3064_v2 = vpop.permute.xlu1 %3063 }
0x108a   :  { %3052 = vrot.lane.b32.xlu0 %v3047_v21, %s6418_s30 }
0x108c   :  { %v3110_v23 = vpop.trf.xlu0 }
0x108d   :  { %6034 = vmatpush3.msra.mxu1 %v3110_v23 }
0x108e   :  { %6036 = vmatmul.mubr.msk.f32.vlgmr.msra.gmra.mxu1 %vm429_vm6, %v3042_v44  ;;  %6038 = vmatprep.subr.mxu1 %v6423_v52 }
0x108f   :  { %6040 = vmatprep.mubr.msk.f32.mxu1 %vm6424_vm5, %v6423_v52 }
0x10d9   :  { %v3174_v50 = vpop.trf.xlu0  ;;  %v3142_v55 = vpop.trf.xlu1 }
0x10da   :  { %6039 = vmatpush3.msra.mxu1 %v3142_v55  ;;  %6044 = vmatpush3.msra.mxu0 %v3174_v50 }
0x10db   :  { %6041 = vmatmul.mubr.msk.f32.vlgmr.msra.gmra.mxu1 %vm429_vm6, %v3060_v18  ;;  %6046 = vmatmul.mubr.msk.f32.vlgmr.msra.gmra.mxu0 %vm429_vm6, %v3062_v22 }
0x10dc   :  { %6048 = vmatprep.subr.mxu1 %v6423_v52  ;;  %6050 = vmatprep.mubr.msk.f32.mxu1 %vm6424_vm5, %v6423_v52 }
0x10dd   :  { %v3206_v4 = vpop.trf.xlu0  ;;  %6053 = vmatprep.subr.mxu0 %v6423_v52  ;;  %6055 = vmatprep.mubr.msk.f32.mxu0 %vm6424_vm5, %v6423_v52 }
0x10de   :  { %6049 = vmatpush3.msra.mxu1 %v3206_v4 }
0x10df   :  { %6051 = vmatmul.mubr.msk.f32.vlgmr.msra.gmra.mxu1 %vm429_vm6, %v3064_v2  ;;  %6058 = vmatprep.subr.mxu1 %v6423_v52 }
0x10e0   :  { %6060 = vmatprep.mubr.msk.f32.mxu1 %vm6424_vm5, %v6423_v52 }
0x10fc   :  { %v3053_v33 = vpop.permute.xlu0 %3052 }
0x10fd   :  { %v3057_v56 = vadd.f32 %v3053_v33, %v3045_v34 }
0x114e   :  { %v3290_v26 = vpop.f32.mrf.mxu1 }
0x114f   :  { %v3291_v27 = vadd.f32 %v3290_v26, %v6597_v9 }
0x1150   :  { %v6037_v31 = vpop.f32.mrf.mxu1 }
0x1151   :  { %v3510_v32 = vsel %vm429_vm6, %v3291_v27, -inf }
0x1152   :  { %3511 = vmax.xlane.f32.xlu1 %v3510_v32 }
0x1163   :  { %4273 = vrot.lane.b32.xlu1 %v3057_v56, %s6420_s13 }
0x1167   :  { %4275 = vrot.lane.b32.xlu1 %v3057_v56, %s6421_s14 }
0x116b   :  { %3038 = vrot.lane.b32.xlu1 %v3033_v36, %s6418_s30 }
0x116f   :  { %3073 = vrot.lane.b32.xlu1 %v6890_v15, %s6420_s13 }
0x1173   :  { %3076 = vrot.lane.b32.xlu1 %v6890_v15, %s6421_s14 }
0x1177   :  { %4289 = vrot.lane.b32.xlu1 %v3057_v56, %s6419_s10 }
0x119b   :  { %v3362_v28 = vpop.f32.mrf.mxu1  ;;  %v3434_v20 = vpop.f32.mrf.mxu0 }
0x119c   :  { %v3363_v38 = vadd.f32 %v3362_v28, %v6597_v9  ;;  %v3435_v39 = vadd.f32 %v3434_v20, %v6597_v9 }
0x119d   :  { %v6042_v41 = vpop.f32.mrf.mxu1  ;;  %v6047_v42 = vpop.f32.mrf.mxu0 }
0x119e   :  { %v3513_v35 = vsel %vm429_vm6, %v3363_v38, -inf  ;;  %v3516_v43 = vsel %vm429_vm6, %v3435_v39, -inf }
0x119f   :  { %3514 = vmax.xlane.f32.xlu0 %v3513_v35  ;;  %v3506_v46 = vpop.f32.mrf.mxu1  ;;  %3517 = vmax.xlane.f32.xlu1 %v3516_v43 }
0x11a0   :  { %v3507_v47 = vadd.f32 %v3506_v46, %v6597_v9 }
0x11a1   :  { %v6052_v51 = vpop.f32.mrf.mxu1 }
0x11a2   :  { %v3519_v48 = vsel %vm429_vm6, %v3507_v47, -inf }
0x11a3   :  { %3520 = vmax.xlane.f32.xlu1 %v3519_v48 }
0x11b5   :  { %4277 = vrot.lane.b32.xlu0 %v3057_v56, %s6422_s1 }
0x11b9   :  { %3079 = vrot.lane.b32.xlu0 %v6890_v15, %s6422_s1 }
0x11db   :  { %v3512_v53 = vpop.xlane.xlu1 %3511 }
0x11dc   :  { %v3522_v7 = vsub.f32 %v3291_v27, %v3512_v53 }
0x11de   :  { %v3526_v13 = vmul.f32 1.442695, %v3522_v7 }
0x11df   :  { %v4274_v54 = vpop.permute.xlu1 %4273 }
0x11e0   :  { %4291 = vrot.lane.b32.xlu0 %v4274_v54, %s6419_s10 }
0x11e3   :  { %v4276_v57 = vpop.permute.xlu1 %4275 }
0x11e4   :  { %4293 = vrot.lane.b32.xlu1 %v4276_v57, %s6419_s10 }
0x11e7   :  { %v3039_v58 = vpop.permute.xlu1 %3038 }
0x11e8   :  { %v6945_v1 = vadd.f32 %v3039_v58, %v3031_v37 }
0x11eb   :  { %v3074_v59 = vpop.permute.xlu1 %3073 }
0x11ef   :  { %v3077_v29 = vpop.permute.xlu1 %3076 }
0x11f3   :  { %v4290_v9 = vpop.permute.xlu1 %4289 }
0x1228   :  { %v3515_v60 = vpop.xlane.xlu0 %3514  ;;  %v3518_v14 = vpop.xlane.xlu1 %3517 }
0x1229   :  { %v3523_v61 = vsub.f32 %v3363_v38, %v3515_v60  ;;  %v3524_v17 = vsub.f32 %v3435_v39, %v3518_v14 }
0x122b   :  { %v3528_v62 = vmul.f32 1.442695, %v3523_v61  ;;  %v3530_v21 = vmul.f32 1.442695, %v3524_v17 }
0x122c   :  { %v4278_v16 = vpop.permute.xlu0 %4277  ;;  %v3521_v63 = vpop.xlane.xlu1 %3520 }
0x122d   :  { %6273 = vpow2.f32 %v3528_v62  ;;  %v3525_v40 = vsub.f32 %v3507_v47, %v3521_v63  ;;  %4295 = vrot.lane.b32.xlu1 %v4278_v16, %s6419_s10 }
0x122f   :  { %v3532_v5 = vmul.f32 1.442695, %v3525_v40 }
0x1230   :  { %v3080_v50 = vpop.permute.xlu0 %3079 }
0x1231   :  { %6275 = vpow2.f32 %v3532_v5  ;;  %4266 = vrot.lane.b32.xlu1 %v6945_v1, %s6420_s13 }
0x1232   :  { %6277 = vpow2.f32 %v3526_v13 }
0x1233   :  { %6279 = vpow2.f32 %v3530_v21 }
0x123a   :  { %v6274_v6 = vpop.eup %6273 }
0x123b   :  { %v3537_v44 = vsel %vm429_vm6, %v6274_v6, 0.0 }
0x123c   :  { %3538 = vadd.xlane.f32.xlu0 %v3537_v44 }
0x123e   :  { %v6276_v8 = vpop.eup %6275 }
0x123f   :  { %v3543_v10 = vsel %vm429_vm6, %v6276_v8, 0.0  ;;  %v6278_v22 = vpop.eup %6277 }
0x1240   :  { %3544 = vadd.xlane.f32.xlu0 %v3543_v10  ;;  %v3534_v23 = vsel %vm429_vm6, %v6278_v22, 0.0  ;;  %v6280_v18 = vpop.eup %6279 }
0x1241   :  { %v3540_v2 = vsel %vm429_vm6, %v6280_v18, 0.0 }
0x1252   :  { %v4292_v4 = vpop.permute.xlu0 %4291 }
0x1255   :  { %3535 = vadd.xlane.f32.xlu1 %v3534_v23 }
0x1256   :  { %4270 = vrot.lane.b32.xlu0 %v6945_v1, %s6422_s1  ;;  %v4294_v55 = vpop.permute.xlu1 %4293 }
0x1259   :  { %3541 = vadd.xlane.f32.xlu1 %v3540_v2 }
0x126a   :  { %4268 = vrot.lane.b32.xlu1 %v6945_v1, %s6421_s14 }
0x1274   :  { %3586 = vxpose.xlu0.b32.start.end [1/1] (short) (narrow) %v3074_v59, 8 }
0x1278   :  { %3618 = vxpose.xlu0.b32.start.end [1/1] (short) (narrow) %v3077_v29, 8 }
0x127c   :  { %3650 = vxpose.xlu0.b32.start.end [1/1] (short) (narrow) %v3080_v50, 8 }
0x1280   :  { %4301 = vxpose.xlu0.b32.start.end [1/1] (short) (narrow) %v4290_v9, 8 }
0x1284   :  { %4365 = vxpose.xlu0.b32.start.end [1/1] (short) (narrow) %v4294_v55, 8 }
0x1293   :  { %3554 = vxpose.xlu1.b32.start.end [1/1] (short) (narrow) %v6890_v15, 8 }
0x1297   :  { %4333 = vxpose.xlu1.b32.start.end [1/1] (short) (narrow) %v4292_v4, 8 }
0x129f   :  { %v4296_v26 = vpop.permute.xlu1 %4295 }
0x12a0   :  { %4397 = vxpose.xlu1.b32.start.end [1/1] (short) (narrow) %v4296_v26, 8 }
0x12a3   :  { %v4267_v33 = vpop.permute.xlu1 %4266 }
0x12c5   :  { %v3539_v27 = vpop.xlane.xlu0 %3538 }
0x12c6   :  { %6281 = vrcp.f32 %v3539_v27 }
0x12c9   :  { %v3545_v34 = vpop.xlane.xlu0 %3544 }
0x12cd   :  { %v4271_v28 = vpop.permute.xlu0 %4270 }
0x12d3   :  { %v6282_v31 = vpop.eup %6281 }
0x12d4   :  { %v3551_v32 = vmul.f32 %v6282_v31, %v6274_v6 }
0x12d6   :  { %6059 = vmatpush3.xpose.msk.msra.mxu1 %vm429_vm6, %v3551_v32 }
0x12d7   :  { %6068 = vmatprep.subr.mxu1 %v6423_v52 }
0x12de   :  { %v3536_v56 = vpop.xlane.xlu1 %3535 }
0x12df   :  { %6283 = vrcp.f32 %v3536_v56 }
0x12e0   :  { %6285 = vrcp.f32 %v3545_v34 }
0x12e2   :  { %v3542_v35 = vpop.xlane.xlu1 %3541 }
0x12e3   :  { %6287 = vrcp.f32 %v3542_v35 }
0x12e6   :  { %v4269_v43 = vpop.permute.xlu1 %4268 }
0x12ec   :  { %v6284_v36 = vpop.eup %6283 }
0x12ed   :  { %v6286_v15 = vpop.eup %6285  ;;  %v3550_v20 = vmul.f32 %v6284_v36, %v6278_v22 }
0x12ee   :  { %v3553_v39 = vmul.f32 %v6286_v15, %v6276_v8 }
0x12ef   :  { %6054 = vmatpush3.xpose.msk.msra.mxu0 %vm429_vm6, %v3550_v20 }
0x12f0   :  { %v3602_v38 = vpop.trf.xlu0  ;;  %6063 = vmatprep.subr.mxu0 %v6423_v52  ;;  %v6288_v46 = vpop.eup %6287 }
0x12f1   :  { %6061 = vmatmul.mubr.msk.f32.vlgmr.msra.gmra.mxu1 %vm429_vm6, %v3602_v38  ;;  %v3552_v51 = vmul.f32 %v6288_v46, %v6280_v18 }
0x12f2   :  { %6069 = vmatpush3.xpose.msk.msra.mxu1 %vm429_vm6, %v3553_v39  ;;  %6070 = vmatprep.mubr.msk.f32.mxu1 %vm6424_vm5, %v6423_v52 }
0x12f3   :  { %6078 = vmatprep.subr.mxu1 %v6423_v52 }
0x12f4   :  { %v3634_v41 = vpop.trf.xlu0 }
0x12f8   :  { %v3666_v42 = vpop.trf.xlu0 }
0x12f9   :  { %6071 = vmatmul.mubr.msk.f32.vlgmr.msra.gmra.mxu1 %vm429_vm6, %v3666_v42 }
0x12fa   :  { %6080 = vmatprep.mubr.msk.f32.mxu1 %vm6424_vm5, %v6423_v52 }
0x12fc   :  { %v4317_v48 = vpop.trf.xlu0 }
0x1300   :  { %v4381_v54 = vpop.trf.xlu0 }
0x130f   :  { %v3570_v47 = vpop.trf.xlu1 }
0x1310   :  { %6056 = vmatmul.mubr.msk.f32.vlgmr.msra.gmra.mxu0 %vm429_vm6, %v3570_v47 }
0x1311   :  { %6064 = vmatpush3.xpose.msk.msra.mxu0 %vm429_vm6, %v3552_v51  ;;  %6065 = vmatprep.mubr.msk.f32.mxu0 %vm6424_vm5, %v6423_v52 }
0x1312   :  { %6073 = vmatprep.subr.mxu0 %v6423_v52 }
0x1313   :  { %v4349_v53 = vpop.trf.xlu1 }
0x1314   :  { %6066 = vmatmul.mubr.msk.f32.vlgmr.msra.gmra.mxu0 %vm429_vm6, %v3634_v41  ;;  %6079 = vmatpush3.msra.mxu1 %v4349_v53 }
0x1315   :  { %6081 = vmatmul.mubr.msk.f32.vlgmr.msra.gmra.mxu1 %vm429_vm6, %v4267_v33  ;;  %6074 = vmatpush3.msra.mxu0 %v4317_v48 }
0x1316   :  { %6075 = vmatprep.mubr.msk.f32.mxu0 %vm6424_vm5, %v6423_v52  ;;  %6083 = vmatprep.subr.mxu0 %v6423_v52 }
0x1317   :  { %6088 = vmatprep.subr.mxu1 %v6423_v52  ;;  %6090 = vmatprep.mubr.msk.f32.mxu1 %vm6424_vm5, %v6423_v52 }
0x1318   :  { %6076 = vmatmul.mubr.msk.f32.vlgmr.msra.gmra.mxu0 %vm429_vm6, %v6945_v1 }
0x1319   :  { %6084 = vmatpush3.msra.mxu0 %v4381_v54  ;;  %6085 = vmatprep.mubr.msk.f32.mxu0 %vm6424_vm5, %v6423_v52 }
0x131a   :  { %6093 = vmatprep.subr.mxu0 %v6423_v52 }
0x131c   :  { %6086 = vmatmul.mubr.msk.f32.vlgmr.msra.gmra.mxu0 %vm429_vm6, %v4269_v43  ;;  %v4413_v57 = vpop.trf.xlu1 }
0x131d   :  { %6089 = vmatpush3.msra.mxu1 %v4413_v57  ;;  %6095 = vmatprep.mubr.msk.f32.mxu0 %vm6424_vm5, %v6423_v52 }
0x131e   :  { %6091 = vmatmul.mubr.msk.f32.vlgmr.msra.gmra.mxu1 %vm429_vm6, %v4271_v28  ;;  %6098 = vmatprep.subr.mxu1 %v6423_v52 }
0x131f   :  { %6100 = vmatprep.mubr.msk.f32.mxu1 %vm6424_vm5, %v6423_v52 }
0x13b1   :  { %v6995_v58 = vpop.f32.mrf.mxu1 }
0x13b3   :  { %v6062_v59 = vpop.f32.mrf.mxu1 }
0x13b9   :  { %v6997_v29 = vpop.f32.mrf.mxu1 }
0x13bb   :  { %v6072_v9 = vpop.f32.mrf.mxu1 }
0x13d0   :  { %v3754_v60 = vpop.f32.mrf.mxu0 }
0x13d2   :  { %v6057_v14 = vpop.f32.mrf.mxu0 }
0x13d4   :  { %v3906_v61 = vpop.f32.mrf.mxu0 }
0x13d5   :  { %v4569_v62 = vpop.f32.mrf.mxu1 }
0x13d6   :  { %v4570_v16 = vadd.f32 %v4569_v62, %v6515_v19  ;;  %v6067_v63 = vpop.f32.mrf.mxu0 }
0x13d7   :  { %v6082_v0 = vpop.f32.mrf.mxu1 }
0x13d8   :  { %v4497_v37 = vpop.f32.mrf.mxu0  ;;  %v4720_v40 = vsel %vm429_vm6, %v4570_v16, -inf }
0x13d9   :  { %v4498_v1 = vadd.f32 %v4497_v37, %v6515_v19  ;;  %4721 = vmax.xlane.f32.xlu1 %v4720_v40 }
0x13da   :  { %v6077_v5 = vpop.f32.mrf.mxu0 }
0x13db   :  { %v4717_v6 = vsel %vm429_vm6, %v4498_v1, -inf }
0x13dc   :  { %4718 = vmax.xlane.f32.xlu0 %v4717_v6  ;;  %v4641_v44 = vpop.f32.mrf.mxu0 }
0x13dd   :  { %v4642_v7 = vadd.f32 %v4641_v44, %v6515_v19 }
0x13de   :  { %v6087_v8 = vpop.f32.mrf.mxu0  ;;  %v4713_v10 = vpop.f32.mrf.mxu1 }
0x13df   :  { %v4714_v13 = vadd.f32 %v4713_v10, %v6515_v19  ;;  %v4723_v17 = vsel %vm429_vm6, %v4642_v7, -inf }
0x13e0   :  { %v6092_v21 = vpop.f32.mrf.mxu1  ;;  %4724 = vmax.xlane.f32.xlu1 %v4723_v17 }
0x13e1   :  { %v4726_v22 = vsel %vm429_vm6, %v4714_v13, -inf }
0x13e2   :  { %4727 = vmax.xlane.f32.xlu0 %v4726_v22 }
0x13f1   :  { %4280 = vrot.lane.b32.xlu1 %v6913_v25, %s6420_s13 }
0x13f5   :  { %4286 = vrot.lane.b32.xlu1 %v6913_v25, %s6422_s1 }
0x13f8   :  { %4283 = vrot.lane.b32.xlu0 %v6913_v25, %s6421_s14 }
0x1462   :  { %v4722_v23 = vpop.xlane.xlu1 %4721 }
0x1463   :  { %v4730_v18 = vsub.f32 %v4570_v16, %v4722_v23 }
0x1465   :  { %v4719_v2 = vpop.xlane.xlu0 %4718  ;;  %v4735_v50 = vmul.f32 1.442695, %v4730_v18 }
0x1466   :  { %v4729_v19 = vsub.f32 %v4498_v1, %v4719_v2 }
0x1468   :  { %v4733_v55 = vmul.f32 1.442695, %v4729_v19 }
0x1469   :  { %v4725_v4 = vpop.xlane.xlu1 %4724 }
0x146a   :  { %6289 = vpow2.f32 %v4733_v55  ;;  %v4731_v26 = vsub.f32 %v4642_v7, %v4725_v4 }
0x146b   :  { %v4728_v27 = vpop.xlane.xlu0 %4727  ;;  %6291 = vpow2.f32 %v4735_v50 }
0x146c   :  { %v4737_v31 = vmul.f32 1.442695, %v4731_v26  ;;  %v4732_v32 = vsub.f32 %v4714_v13, %v4728_v27 }
0x146d   :  { %v4281_v41 = vpop.permute.xlu1 %4280 }
0x146e   :  { %6293 = vpow2.f32 %v4737_v31  ;;  %v4739_v33 = vmul.f32 1.442695, %v4732_v32 }
0x146f   :  { %v4284_v35 = vpop.permute.xlu0 %4283 }
0x1470   :  { %6295 = vpow2.f32 %v4739_v33 }
0x1471   :  { %v4287_v42 = vpop.permute.xlu1 %4286 }
0x1477   :  { %v6290_v34 = vpop.eup %6289 }
0x1478   :  { %v4741_v56 = vsel %vm429_vm6, %v6290_v34, 0.0  ;;  %v6292_v36 = vpop.eup %6291 }
0x1479   :  { %4742 = vadd.xlane.f32.xlu0 %v4741_v56  ;;  %v4744_v15 = vsel %vm429_vm6, %v6292_v36, 0.0 }
0x147b   :  { %v6294_v28 = vpop.eup %6293 }
0x147c   :  { %v4747_v20 = vsel %vm429_vm6, %v6294_v28, 0.0 }
0x147d   :  { %v6296_v38 = vpop.eup %6295  ;;  %4745 = vadd.xlane.f32.xlu0 %v4744_v15  ;;  %4748 = vadd.xlane.f32.xlu1 %v4747_v20 }
0x147e   :  { %v4750_v39 = vsel %vm429_vm6, %v6296_v38, 0.0 }
0x1481   :  { %4751 = vadd.xlane.f32.xlu0 %v4750_v39 }
0x14ae   :  { %4793 = vxpose.xlu0.b32.start.end [1/1] (short) (narrow) %v4281_v41, 8 }
0x14b0   :  { %4761 = vxpose.xlu1.b32.start.end [1/1] (short) (narrow) %v6913_v25, 8 }
0x14b2   :  { %4857 = vxpose.xlu0.b32.start.end [1/1] (short) (narrow) %v4287_v42, 8 }
0x14b4   :  { %4825 = vxpose.xlu1.b32.start.end [1/1] (short) (narrow) %v4284_v35, 8 }
0x14b6   :  { %4018 = vxpose.xlu0.b32.start.end [1/1] (short) (narrow) %v6995_v58, 8 }
0x14b8   :  { %3986 = vxpose.xlu1.b32.start.end [1/1] (short) (narrow) %v3754_v60, 8 }
0x14ba   :  { %4082 = vxpose.xlu0.b32.start.end [1/1] (short) (narrow) %v6997_v29, 8 }
0x14bc   :  { %4050 = vxpose.xlu1.b32.start.end [1/1] (short) (narrow) %v3906_v61, 8 }
0x1502   :  { %v4743_v43 = vpop.xlane.xlu0 %4742 }
0x1503   :  { %6297 = vrcp.f32 %v4743_v43 }
0x1506   :  { %v4746_v46 = vpop.xlane.xlu0 %4745  ;;  %v4749_v54 = vpop.xlane.xlu1 %4748 }
0x1507   :  { %6299 = vrcp.f32 %v4746_v46 }
0x150a   :  { %v4752_v53 = vpop.xlane.xlu0 %4751 }
0x150b   :  { %6301 = vrcp.f32 %v4752_v53 }
0x150c   :  { %6303 = vrcp.f32 %v4749_v54 }
0x1510   :  { %v6298_v47 = vpop.eup %6297 }
0x1511   :  { %v4757_v51 = vmul.f32 %v6298_v47, %v6290_v34 }
0x1513   :  { %6094 = vmatpush3.xpose.msk.msra.mxu0 %vm429_vm6, %v4757_v51 }
0x1514   :  { %v6300_v48 = vpop.eup %6299  ;;  %6103 = vmatprep.subr.mxu0 %v6423_v52 }
0x1515   :  { %v4758_v25 = vmul.f32 %v6300_v48, %v6292_v36 }
0x1517   :  { %6099 = vmatpush3.xpose.msk.msra.mxu1 %vm429_vm6, %v4758_v25 }
0x1518   :  { %6108 = vmatprep.subr.mxu1 %v6423_v52  ;;  %v6302_v57 = vpop.eup %6301 }
0x1519   :  { %v6304_v58 = vpop.eup %6303  ;;  %v4760_v29 = vmul.f32 %v6302_v57, %v6296_v38 }
0x151a   :  { %v4759_v60 = vmul.f32 %v6304_v58, %v6294_v28 }
0x152a   :  { %v4809_v59 = vpop.trf.xlu0 }
0x152b   :  { %6101 = vmatmul.mubr.msk.f32.vlgmr.msra.gmra.mxu1 %vm429_vm6, %v4809_v59 }
0x152c   :  { %6109 = vmatpush3.xpose.msk.msra.mxu1 %vm429_vm6, %v4760_v29  ;;  %v4777_v9 = vpop.trf.xlu1  ;;  %6110 = vmatprep.mubr.msk.f32.mxu1 %vm6424_vm5, %v6423_v52 }
0x152d   :  { %6096 = vmatmul.mubr.msk.f32.vlgmr.msra.gmra.mxu0 %vm429_vm6, %v4777_v9  ;;  %6121 = vmatprep.subr.bf16.mxu1 %v6423_v52 }
0x152e   :  { %6104 = vmatpush3.xpose.msk.msra.mxu0 %vm429_vm6, %v4759_v60  ;;  %v4873_v14 = vpop.trf.xlu0  ;;  %6105 = vmatprep.mubr.msk.f32.mxu0 %vm6424_vm5, %v6423_v52 }
0x152f   :  { %6111 = vmatmul.mubr.msk.f32.vlgmr.msra.gmra.mxu1 %vm429_vm6, %v4873_v14  ;;  %6113 = vmatprep.subr.bf16.mxu0 %v6423_v52 }
0x1530   :  { %v4841_v61 = vpop.trf.xlu1  ;;  %6125 = vmatprep.mubr.msk.bf16.mxu1 %vm6424_vm5, %v6423_v52 }
0x1531   :  { %6106 = vmatmul.mubr.msk.f32.vlgmr.msra.gmra.mxu0 %vm429_vm6, %v4841_v61 }
0x1532   :  { %6117 = vmatprep.mubr.msk.bf16.mxu0 %vm6424_vm5, %v6423_v52  ;;  %v4034_v62 = vpop.trf.xlu0 }
0x1534   :  { %v4002_v16 = vpop.trf.xlu1 }
0x1536   :  { %v4098_v63 = vpop.trf.xlu0 }
0x1537   :  { %v4130_v37 = vcombine.low %v4034_v62, %v4098_v63  ;;  %v4131_v40 = vcombine.high %v4034_v62, %v4098_v63 }
0x1538   :  { %v4066_v0 = vpop.trf.xlu1 }
0x1539   :  { %v4114_v1 = vcombine.low %v4002_v16, %v4066_v0  ;;  %v4115_v5 = vcombine.high %v4002_v16, %v4066_v0  ;;  %v4138_v6 = vrot.slane %v4130_v37, %v6724_v3  ;;  %v4145_v44 = vrot.slane %v4131_v40, %v6724_v3 }
0x153b   :  { %v4122_v7 = vrot.slane %v4114_v1, %v6724_v3  ;;  %v4129_v8 = vrot.slane %v4115_v5, %v6724_v3 }
0x153d   :  { %v4146_v10 = vcombine.low %v4122_v7, %v4138_v6  ;;  %v4147_v13 = vcombine.high %v4122_v7, %v4138_v6  ;;  %v4162_v17 = vcombine.low %v4129_v8, %v4145_v44  ;;  %v4163_v21 = vcombine.high %v4129_v8, %v4145_v44  ;;  %v6213_v8 = vld [vmem:[%s7161_s5 + $0x38] sm:$0xff]  }
0x153e   :  { %6114 = vmatpush3.bf16.msra.mxu0 %v6213_v8 }
0x153f   :  { %v4154_v22 = vrot.slane %v4146_v10, %v6731_v12  ;;  %v4161_v23 = vrot.slane %v4147_v13, %v6731_v12  ;;  %v4170_v18 = vrot.slane %v4162_v17, %v6731_v12  ;;  %v4177_v2 = vrot.slane %v4163_v21, %v6731_v12  ;;  %6115 = vmatprep.subr.bf16.mxu0 %v6423_v52 }
0x1541   :  { %v4182_v19 = vcombine.low %v4154_v22, %v4161_v23  ;;  %v5810_v50 = vcombine.high %v4154_v22, %v4161_v23  ;;  %v4198_v55 = vcombine.low %v4170_v18, %v4177_v2  ;;  %v5811_v4 = vcombine.high %v4170_v18, %v4177_v2 }
0x1543   :  { %v4189_v27 = vrot.slane %v4182_v19, %v6724_v3  ;;  %v4197_v31 = vrot.slane %v5810_v50, %v6724_v3  ;;  %v4205_v32 = vrot.slane %v4198_v55, %v6724_v3  ;;  %v4213_v33 = vrot.slane %v5811_v4, %v6724_v3  ;;  %v6214_v55 = vld [vmem:[%s7161_s5 + $0x30] sm:$0xff]  }
0x1544   :  { %6116 = vmatpush3.bf16.msra.mxu0 %v6214_v55 }
0x1545   :  { %v4214_v15 = vcombine.low %v4189_v27, %v4197_v31  ;;  %v4230_v20 = vcombine.low %v4205_v32, %v4213_v33  ;;  %v4215_v40 = vcombine.high %v4189_v27, %v4197_v31  ;;  %v4231_v1 = vcombine.high %v4205_v32, %v4213_v33  ;;  %6129 = vmatprep.subr.bf16.mxu0 %v6423_v52 }
0x1547   :  { %v7053_v41 = vrot.slane %v4214_v15, %v6731_v12  ;;  %v7056_v42 = vrot.slane %v4230_v20, %v6731_v12  ;;  %v4229_v22 = vrot.slane %v4215_v40, %v6731_v12  ;;  %v4245_v23 = vrot.slane %v4231_v1, %v6731_v12 }
0x1549   :  { %v4246_v43 = vcombine.low %v7053_v41, %v7056_v42  ;;  %v4248_v31 = vcombine.low %v4229_v22, %v4245_v23  ;;  %v4247_v33 = vcombine.high %v7053_v41, %v7056_v42  ;;  %v4249_v20 = vcombine.high %v4229_v22, %v4245_v23 }
0x15eb   :  { %v5037_v26 = vpop.f32.mrf.mxu1 }
0x15ec   :  { %5225 = vxpose.xlu0.b32.start.end [1/1] (short) (narrow) %v5037_v26, 8 }
0x15ed   :  { %v4961_v34 = vpop.f32.mrf.mxu0  ;;  %v6102_v56 = vpop.f32.mrf.mxu1 }
0x15ee   :  { %5193 = vxpose.xlu1.b32.start.end [1/1] (short) (narrow) %v4961_v34, 8 }
0x15ef   :  { %v6097_v36 = vpop.f32.mrf.mxu0  ;;  %v5189_v28 = vpop.f32.mrf.mxu1 }
0x15f0   :  { %5289 = vxpose.xlu0.b32.start.end [1/1] (short) (narrow) %v5189_v28, 8 }
0x15f1   :  { %v5113_v38 = vpop.f32.mrf.mxu0  ;;  %v6112_v39 = vpop.f32.mrf.mxu1 }
0x15f2   :  { %5257 = vxpose.xlu1.b32.start.end [1/1] (short) (narrow) %v5113_v38, 8 }
0x15f3   :  { %v6107_v35 = vpop.f32.mrf.mxu0 }
0x1668   :  { %v5241_v46 = vpop.trf.xlu0 }
0x166a   :  { %v5209_v47 = vpop.trf.xlu1 }
0x166c   :  { %v5305_v51 = vpop.trf.xlu0 }
0x166d   :  { %v5337_v48 = vcombine.low %v5241_v46, %v5305_v51  ;;  %v5338_v25 = vcombine.high %v5241_v46, %v5305_v51 }
0x166e   :  { %v5273_v53 = vpop.trf.xlu1 }
0x166f   :  { %v5321_v54 = vcombine.low %v5209_v47, %v5273_v53  ;;  %v5322_v57 = vcombine.high %v5209_v47, %v5273_v53  ;;  %v5345_v58 = vrot.slane %v5337_v48, %v6724_v3  ;;  %v5352_v59 = vrot.slane %v5338_v25, %v6724_v3 }
0x1671   :  { %v5329_v29 = vrot.slane %v5321_v54, %v6724_v3  ;;  %v5336_v9 = vrot.slane %v5322_v57, %v6724_v3 }
0x1673   :  { %v5353_v60 = vcombine.low %v5329_v29, %v5345_v58  ;;  %v5354_v14 = vcombine.high %v5329_v29, %v5345_v58  ;;  %v5369_v61 = vcombine.low %v5336_v9, %v5352_v59  ;;  %v5370_v62 = vcombine.high %v5336_v9, %v5352_v59 }
0x1675   :  { %v5361_v16 = vrot.slane %v5353_v60, %v6731_v12  ;;  %v5368_v63 = vrot.slane %v5354_v14, %v6731_v12  ;;  %v5377_v0 = vrot.slane %v5369_v61, %v6731_v12  ;;  %v5384_v37 = vrot.slane %v5370_v62, %v6731_v12 }
0x1677   :  { %v5389_v5 = vcombine.low %v5361_v16, %v5368_v63  ;;  %v5824_v6 = vcombine.high %v5361_v16, %v5368_v63  ;;  %v5405_v44 = vcombine.low %v5377_v0, %v5384_v37  ;;  %v5825_v7 = vcombine.high %v5377_v0, %v5384_v37 }
0x1679   :  { %v5396_v10 = vrot.slane %v5389_v5, %v6724_v3  ;;  %v5404_v13 = vrot.slane %v5824_v6, %v6724_v3  ;;  %v5412_v17 = vrot.slane %v5405_v44, %v6724_v3  ;;  %v5420_v21 = vrot.slane %v5825_v7, %v6724_v3 }
0x167b   :  { %v5422_v18 = vcombine.high %v5396_v10, %v5404_v13  ;;  %v5438_v2 = vcombine.high %v5412_v17, %v5420_v21  ;;  %v5421_v19 = vcombine.low %v5396_v10, %v5404_v13  ;;  %v5437_v50 = vcombine.low %v5412_v17, %v5420_v21 }
0x167c   :  { %v5550_v13 = vrot.slane %v6863_v45, %v2759_v49  ;;  %v6220_v49 = vld [vmem:[%s7161_s5 + $0x40] sm:$0xff]  }
0x167d   :  { %v5436_v4 = vrot.slane %v5422_v18, %v6731_v12  ;;  %v5452_v26 = vrot.slane %v5438_v2, %v6731_v12  ;;  %v5429_v3 = vrot.slane %v5421_v19, %v6731_v12  ;;  %v5445_v27 = vrot.slane %v5437_v50, %v6731_v12  ;;  %v6217_v2 = vld [vmem:[%s7161_s5 + $0x58] sm:$0xff]   ;;  %v6218_v19 = vld [vmem:[%s7161_s5 + $0x50] sm:$0xff]   ;;  %s6428_s5 = smov [#allocation8]  }
0x167f   :  { %v5455_v32 = vcombine.low %v5436_v4, %v5452_v26  ;;  %v5454_v34 = vcombine.high %v5429_v3, %v5445_v27  ;;  %v5453_v56 = vcombine.low %v5429_v3, %v5445_v27  ;;  %v5456_v15 = vcombine.high %v5436_v4, %v5452_v26 }
0x1681   :  { %v6183_v36 = vpack.i.bf16 %v5455_v32, %v4248_v31  ;;  %v6178_v28 = vpack.i.bf16 %v5454_v34, %v4247_v33  ;;  %v6188_v38 = vpack.i.bf16 %v5456_v15, %v4249_v20 }
0x1683   :  { %6184 = vrot.lane.b32.xlu0 %v6183_v36, %s6408_s27  ;;  %6179 = vrot.lane.b32.xlu1 %v6178_v28, %s6412_s12 }
0x1687   :  { %6189 = vrot.lane.b32.xlu1 %v6188_v38, %s6427_s2 }
0x16f5   :  { %v6185_v12 = vpop.permute.xlu0 %6184  ;;  %v6180_v39 = vpop.permute.xlu1 %6179 }
0x16f6   :  { %v6182_v35 = vunpack.i.h.bf16 %v6180_v39  ;;  %v6181_v46 = vunpack.i.l.bf16 %v6180_v39  ;;  %v6187_v47 = vunpack.i.h.bf16 %v6185_v12  ;;  %v6186_v51 = vunpack.i.l.bf16 %v6185_v12 }
0x16f8   :  { %v4262_v48 = vsel %vm429_vm6, %v4246_v43, %v6181_v46  ;;  %v5469_v25 = vsel %vm429_vm6, %v5453_v56, %v6182_v35 }
0x16f9   :  { %v6190_v53 = vpop.permute.xlu1 %6189  ;;  %v4263_v58 = vsel %vm1471_vm10, %v4262_v48, %v6186_v51  ;;  %v5470_v59 = vsel %vm1471_vm10, %v5469_v25, %v6187_v47 }
0x16fa   :  { %v6192_v54 = vunpack.i.h.bf16 %v6190_v53  ;;  %v6191_v57 = vunpack.i.l.bf16 %v6190_v53 }
0x16fc   :  { %v4264_v29 = vsel %vm1473_vm11, %v4263_v58, %v6191_v57  ;;  %v5471_v9 = vsel %vm1473_vm11, %v5470_v59, %v6192_v54 }
0x16fd   :  { %v5472_v60 = vpack.c.bf16 %v5471_v9, %v4264_v29 }
0x16ff   :  { %6118 = vmatmul.mubr.msk.bf16.vlgmr.msra.gmra.mxu0 %vm126_vm0, %v5472_v60 }
0x1700   :  { %6137 = vmatprep.mubr.msk.bf16.mxu0 %vm6424_vm5, %v6423_v52  ;;  %6130 = vmatpush3.bf16.msra.mxu0 %v6217_v2 }
0x1701   :  { %6131 = vmatprep.subr.bf16.mxu0 %v6423_v52 }
0x1704   :  { %6132 = vmatpush3.bf16.msra.mxu0 %v6218_v19 }
0x1705   :  { %6133 = vmatprep.subr.bf16.mxu0 %v6423_v52 }
0x1708   :  { %6134 = vmatpush3.bf16.msra.mxu0 %v6219_v11 }
0x1709   :  { %6135 = vmatprep.subr.bf16.mxu0 %v6423_v52 }
0x170c   :  { %6136 = vmatpush3.bf16.msra.mxu0 %v6220_v49 }
0x17bf   :  { %v5522_v41 = vpop.f32.mrf.mxu0 }
0x17c0   :  { %v7104_v42 = vadd.f32 %v5522_v41, %v6839_v24  ;;  %v6215_v24 = vld [vmem:[%s7160_s4 + $0x18] sm:$0xff]  }
0x17c1   :  { %v6119_v43 = vpop.f32.mrf.mxu0  ;;  %6122 = vmatpush3.bf16.msra.mxu1 %v6215_v24 }
0x17c2   :  { %v5531_v14 = vmul.f32 %v7104_v42, %v7104_v42  ;;  %6123 = vmatprep.subr.bf16.mxu1 %v6423_v52 }
0x17c3   :  { %v5525_v61 = vpop.f32.mrf.mxu0 }
0x17c4   :  { %v7109_v62 = vadd.f32 %v5525_v61, %v6844_v30  ;;  %v5533_v16 = vsel %vm126_vm0, %v5531_v14, 0.0  ;;  %v6216_v30 = vld [vmem:[%s7160_s4 + $0x10] sm:$0xff]  }
0x17c5   :  { %5534 = vadd.xlane.f32.xlu1 %v5533_v16  ;;  %v6120_v63 = vpop.f32.mrf.mxu0  ;;  %6124 = vmatpush3.bf16.msra.mxu1 %v6216_v30 }
0x17c6   :  { %v5532_v0 = vmul.f32 %v7109_v62, %v7109_v62 }
0x17c8   :  { %v5536_v37 = vsel %vm126_vm0, %v5532_v0, 0.0 }
0x17c9   :  { %5537 = vadd.xlane.f32.xlu0 %v5536_v37 }
0x184e   :  { %v5535_v40 = vpop.xlane.xlu1 %5534 }
0x184f   :  { %v5539_v1 = vmul.f32 0.03125, %v5535_v40 }
0x1851   :  { %v5541_v5 = vadd.f32 1e-05, %v5539_v1 }
0x1852   :  { %v5538_v6 = vpop.xlane.xlu0 %5537 }
0x1853   :  { %6305 = vrsqrt.f32 %v5541_v5  ;;  %v5540_v44 = vmul.f32 0.03125, %v5538_v6 }
0x1855   :  { %v5542_v7 = vadd.f32 1e-05, %v5540_v44 }
0x1857   :  { %6307 = vrsqrt.f32 %v5542_v7 }
0x1860   :  { %v6306_v8 = vpop.eup %6305 }
0x1861   :  { %v5545_v10 = vmul.f32 %v6306_v8, %v7104_v42 }
0x1863   :  { %v5551_v22 = vmul.f32 %v5550_v13, %v5545_v10 }
0x1864   :  { %v6308_v17 = vpop.eup %6307 }
0x1865   :  { %v5546_v21 = vmul.f32 %v6308_v17, %v7109_v62 }
0x1867   :  { %v5552_v23 = vmul.f32 %v5550_v13, %v5546_v21 }
0x1869   :  { %v5553_v18 = vpack.c.bf16 %v5552_v23, %v5551_v22 }
0x186b   :  { %6126 = vmatmul.mubr.msk.bf16.vlgmr.msra.gmra.mxu1 %vm126_vm0, %v5553_v18 }
0x192b   :  { %v5603_v45 = vpop.f32.mrf.mxu1 }
0x192c   :  { %5626 = vrot.lane.b32.xlu1 %v5603_v45, %s6419_s10  ;;  %v5832_v26 = vmul.f32 -1.442695, %v5603_v45 }
0x192d   :  { %v6127_v50 = vpop.f32.mrf.mxu1 }
0x192e   :  { %6309 = vpow2.f32 %v5832_v26 }
0x192f   :  { %v5606_v55 = vpop.f32.mrf.mxu1 }
0x1930   :  { %5628 = vrot.lane.b32.xlu0 %v5606_v55, %s6419_s10  ;;  %v5833_v3 = vmul.f32 -1.442695, %v5606_v55  ;;  %s5712_s10 = sshll.u32 %s6428_s5, 4  ;;  %s5713_s10 = int_to_ptr.vmem [resolvable:$true] %s5712_s10 }
0x1931   :  { %v6128_v4 = vpop.f32.mrf.mxu1  ;;  %s6381_s20 = scalar_lea.vmem %s5713_s10, 256  ;;  %p6386_p2 = scmp.lt.s32.totalorder %s5713_s10, %s5713_s10 }
0x1932   :  { %6311 = vpow2.f32 %v5833_v3  ;;  %p6382_p1 = scmp.ne.s32.totalorder %s5713_s10, %s6381_s20  ;;  %p6387_p3 = scmp.lt.s32.totalorder %s6381_s20, %s6381_s20 }
0x1934   :  { %p6388_p4 = por %p6387_p3, %p6386_p2 }
0x1936   :  { %p6389_p5 = pnand %p6388_p4, %p6382_p1 }
0x193b   :  { %v6310_v27 = vpop.eup %6309 }
0x193c   :  { %v5616_v52 = vadd.f32 1.0, %v6310_v27 }
0x193e   :  { %6313 = vrcp.f32 %v5616_v52 }
0x193f   :  { %v6312_v31 = vpop.eup %6311 }
0x1940   :  { %v5617_v32 = vadd.f32 1.0, %v6312_v31 }
0x1942   :  { %6315 = vrcp.f32 %v5617_v32 }
0x194b   :  { %v6314_v33 = vpop.eup %6313 }
0x194c   :  { %v5622_v36 = vmul.f32 %v6314_v33, %v5603_v45 }
0x194f   :  { %v6316_v34 = vpop.eup %6315 }
0x1950   :  { %v5623_v28 = vmul.f32 %v6316_v34, %v5606_v55 }
0x199e   :  { %v5627_v56 = vpop.permute.xlu1 %5626 }
0x199f   :  { %v5632_v20 = vmul.f32 %v5627_v56, %v5622_v36 }
0x19a2   :  { %v5629_v15 = vpop.permute.xlu0 %5628 }
0x19a3   :  { %v5633_v38 = vmul.f32 %v5629_v15, %v5623_v28 }
0x19a5   :  { %v5634_v12 = vpack.c.bf16 %v5633_v38, %v5632_v20 }
0x19a7   :  { %6138 = vmatmul.mubr.msk.bf16.vlgmr.msra.gmra.mxu0 %vm2869_vm12, %v5634_v12 }
0x1a67   :  { %v5696_v39 = vpop.f32.mrf.mxu0 }
0x1a68   :  { %v5703_v35 = vadd.f32 %v5696_v39, %v7104_v42 }
0x1a69   :  { %v6139_v46 = vpop.f32.mrf.mxu0 }
0x1a6a   :  { %5705 = vst.msk [vmem:[#allocation8] sm:$0xff] %vm126_vm0, %v5703_v35 }
0x1a6b   :  { %v5699_v47 = vpop.f32.mrf.mxu0 }
0x1a6c   :  { %v5704_v51 = vadd.f32 %v5699_v47, %v7109_v62 }
0x1a6d   :  { %v6140_v48 = vpop.f32.mrf.mxu0 }
0x1a6e   :  { %5706 = vst.msk [vmem:[#allocation8 + $0x8] sm:$0xff] %vm126_vm0, %v5704_v51 }
0x1a6f   :  { %6392 = shalt.err (!%p6389_p5)
}
0x1a70   :  { %5718 = dma.vmem_to_hbm [thread:$0]  %s5713_s10, 256, %s7163_s7, [#allocation4], %s6411_s11, %s6411_s11, %s6412_s12  }
0x1a71   :  { %6405 = dma.done.wait [#allocation4], 256  }
0x1a72   :  { %6406 = vsyncadd [#allocation4], 4294967040 }
0x1a73   :  { %5722 = vsyncpa [#allocation3], 1 }
0x1a74   :  { %5723 = vsyncpa [#allocation6], 1 }
0x1a75   :  { %5724 = vsyncpa [#allocation4], 1 }

</bundles_post_ra>
